<compile_context>
chip_gen: v7x
topology: tpu7x:2x2x1
jax: 0.10.0
libtpu: 0.0.40
codegen_flags: <defaults>
</compile_context>

<pallas_src>
import math

import jax
import jax.numpy as jnp
from jax.experimental import pallas as pl
from jax.experimental.pallas import tpu as pltpu


# ----------------------------------------------------------------------------
# helpers
# ----------------------------------------------------------------------------
def _gelu_exact(x):
    # Exact-erf GELU (torch nn.functional.gelu default). erf lowers to the EUP,
    # and this path is hoisted out of the recurrence anyway.
    return 0.5 * x * (1.0 + jax.lax.erf(x * 0.7071067811865476))


# ----------------------------------------------------------------------------
# Fully fused ModelGRU kernel (whole batch block per grid step)
# ----------------------------------------------------------------------------
def _make_model_kernel(T, BB, D, n_layers):
    f32 = jnp.float32
    bf16 = jnp.bfloat16

    def kernel(*refs):
        # refs: x, proj_w, proj_b, n_layers*[gamma, beta, wi, bi, wh, bh],
        #       cls_w, cls_b, out
        x_ref, pw_ref, pb_ref = refs[0], refs[1], refs[2]
        lrefs = refs[3:3 + 6 * n_layers]
        cw_ref, cb_ref, o_ref = refs[3 + 6 * n_layers:]

        # ---- projector (hoisted; one MXU matmul over all (t, b) rows) -------
        # x_ref is (T, BB, 2D) in (t, b)-major order; collapse to a 2D slab.
        xb = x_ref[...].reshape(T * BB, 2 * D)
        act = jnp.dot(xb, pw_ref[...], preferred_element_type=f32) + pb_ref[...]

        for l in range(n_layers):
            gamma = lrefs[6 * l + 0][...]     # (1, D)
            beta  = lrefs[6 * l + 1][...]     # (1, D)
            wi    = lrefs[6 * l + 2][...]     # (D, 3D)  gate order [r | z | n]
            bi    = lrefs[6 * l + 3][...]     # (1, 3D)
            wh    = lrefs[6 * l + 4][...]     # (D, 3D)
            bh    = lrefs[6 * l + 5][...]     # (1, 3D)

            # ---- hoisted, time-independent part ------------------------------
            # LayerNorm (eps=1e-5, biased variance, as nn.LayerNorm) + exact GELU
            mean = jnp.mean(act, axis=-1, keepdims=True)
            cen = act - mean
            var = jnp.mean(cen * cen, axis=-1, keepdims=True)
            y = cen * jax.lax.rsqrt(var + 1e-5) * gamma + beta
            g = _gelu_exact(y)

            # Fold bi (all gates) and the r/z part of bh into the hoisted slab.
            is_rz = jax.lax.broadcasted_iota(jnp.int32, (1, 3 * D), 1) < (2 * D)
            bias_x = bi + jnp.where(is_rz, bh, 0.0)

            # Input-side gates for ALL (t, b) rows in one f32 MXU matmul.
            gx = jnp.dot(g, wi, preferred_element_type=f32) + bias_x   # (T*BB, 3D)

            bh_n = bh[:, 2 * D:]                       # (1, D), stays in per-step n-gate
            wh_bf = wh.astype(bf16)                    # single bf16 pass per step

            # Per-timestep contiguous slices (depend only on gx -> off the chain).
            gx_t = [gx[t * BB:(t + 1) * BB, :] for t in range(T)]
            gxn_t = [v[:, 2 * D:] for v in gx_t]

            # ---- sequential recurrence (fully unrolled, one small matmul/step)
            h = jnp.zeros((BB, D), f32)
            hs = []
            for t in range(T):
                gh = jnp.dot(h.astype(bf16), wh_bf,
                             preferred_element_type=f32)               # (BB, 3D)
                s = jax.nn.sigmoid(gx_t[t] + gh)       # one full sigmoid; slice after
                r = s[:, :D]
                z = s[:, D:2 * D]
                n = jnp.tanh(gxn_t[t] + r * (gh[:, 2 * D:] + bh_n))
                h = (1.0 - z) * n + z * h
                hs.append(h)

            # TODO(synk): nn.Dropout is identity in eval mode; no RNG masking applied.
            act = jnp.concatenate(hs, axis=0)          # (T*BB, D), (t, b)-major

        # ---- classifier (one matmul on the whole slab, one dense writeback) --
        out = jnp.dot(act, cw_ref[...], preferred_element_type=f32) + cb_ref[...]
        o_ref[...] = out.reshape(T, BB, 2).astype(o_ref.dtype)

    return kernel


def model_gru_forward(x, params, *, num_batch_blocks=1):
    # x: (B, T, 2*D) -> (B, T, 2)
    # num_batch_blocks=1: whole batch in one kernel invocation (best on v5e/v6e).
    # num_batch_blocks=2 on v7x: batch split over a "parallel" grid -> megacore.
    b, t, din = x.shape
    d = params["proj_w"].shape[1]
    n_layers = len(params["gru_layers"])
    g = num_batch_blocks
    assert b % g == 0, (b, g)
    bb = b // g

    # Tiny (<=4 KB) relayout to (t, b)-major so all per-timestep work inside the
    # kernel is contiguous leading-dim slices. Done as plain XLA ops outside.
    x_tb = jnp.transpose(x.reshape(g, bb, t, din), (0, 2, 1, 3))   # (G, T, BB, 2D)

    def const_spec(shape):
        nd = len(shape)
        return pl.BlockSpec(shape, lambda i, _nd=nd: (0,) * _nd)

    in_specs = [pl.BlockSpec((None, t, bb, din), lambda i: (i, 0, 0, 0)),
                const_spec((din, d)), const_spec((1, d))]
    args = [x_tb, params["proj_w"], params["proj_b"]]
    for lp in params["gru_layers"]:
        in_specs += [const_spec((1, d)), const_spec((1, d)),
                     const_spec((d, 3 * d)), const_spec((1, 3 * d)),
                     const_spec((d, 3 * d)), const_spec((1, 3 * d))]
        args += [lp["gamma"], lp["beta"], lp["wi"], lp["bi"], lp["wh"], lp["bh"]]
    in_specs += [const_spec((d, 2)), const_spec((1, 2))]
    args += [params["cls_w"], params["cls_b"]]

    out_tb = pl.pallas_call(
        _make_model_kernel(t, bb, d, n_layers),
        out_shape=jax.ShapeDtypeStruct((g, t, bb, 2), jnp.float32),
        grid=(g,),
        in_specs=in_specs,
        out_specs=pl.BlockSpec((None, t, bb, 2), lambda i: (i, 0, 0, 0)),
        compiler_params=pltpu.CompilerParams(
            dimension_semantics=("parallel",)),        # megacore split on v7x when g>1
    )(*args)

    # (G, T, BB, 2) -> (B, T, 2)
    return jnp.transpose(out_tb, (0, 2, 1, 3)).reshape(b, t, 2)


# ----------------------------------------------------------------------------
# Deterministic parameter init (shapes from ModelGRU.__init__; gates fused r|z|n)
# ----------------------------------------------------------------------------
def init_params(key, d, n_rnn_layers):
    ks = jax.random.split(key, 4 + n_rnn_layers)

    bp = 1.0 / math.sqrt(2.0 * d)     # projector: Linear(2D -> D)
    bc = 1.0 / math.sqrt(float(d))    # classifier: Linear(D -> 2)
    proj_w = jax.random.uniform(ks[0], (2 * d, d), jnp.float32, -bp, bp)
    proj_b = jax.random.uniform(ks[1], (1, d), jnp.float32, -bp, bp)
    cls_w = jax.random.uniform(ks[2], (d, 2), jnp.float32, -bc, bc)
    cls_b = jax.random.uniform(ks[3], (1, 2), jnp.float32, -bc, bc)

    layers = []
    bg = 1.0 / math.sqrt(float(d))    # GRU init bound: 1/sqrt(hidden)
    for i in range(n_rnn_layers):
        lk = jax.random.split(ks[4 + i], 4)
        layers.append(dict(
            gamma=jnp.ones((1, d), jnp.float32),
            beta=jnp.zeros((1, d), jnp.float32),
            # fused gate weights/biases, order (r, z, n), stored transposed (in, 3*out)
            wi=jax.random.uniform(lk[0], (d, 3 * d), jnp.float32, -bg, bg),
            bi=jax.random.uniform(lk[1], (1, 3 * d), jnp.float32, -bg, bg),
            wh=jax.random.uniform(lk[2], (d, 3 * d), jnp.float32, -bg, bg),
            bh=jax.random.uniform(lk[3], (1, 3 * d), jnp.float32, -bg, bg),
        ))

    return dict(proj_w=proj_w, proj_b=proj_b, cls_w=cls_w, cls_b=cls_b,
                gru_layers=layers)


if __name__ == "__main__":
    B, T, D = 2, 8, 32
    N_RNN_LAYERS = 2

    key = jax.random.PRNGKey(0)
    k_x, k_p = jax.random.split(key)
    x = jax.random.normal(k_x, (B, T, 2 * D), dtype=jnp.float32)
    params = init_params(k_p, D, N_RNN_LAYERS)

    fwd = jax.jit(model_gru_forward)
    y = fwd(x, params)
    jax.block_until_ready(y)

    assert y.shape == (B, T, 2), y.shape
    assert y.dtype == jnp.float32
    assert bool(jnp.all(jnp.isfinite(y)))
    print("KERNEL_OK")
</pallas_src>

<mosaic_0001>
module attributes {stable_mosaic.version = 11 : i64} {
  func.func @kernel(%arg0: i32, %arg1: memref<1x8x2x64xf32, #tpu.memory_space<vmem>>, %arg2: memref<64x32xf32, #tpu.memory_space<vmem>>, %arg3: memref<1x32xf32, #tpu.memory_space<vmem>>, %arg4: memref<1x32xf32, #tpu.memory_space<vmem>>, %arg5: memref<1x32xf32, #tpu.memory_space<vmem>>, %arg6: memref<32x96xf32, #tpu.memory_space<vmem>>, %arg7: memref<1x96xf32, #tpu.memory_space<vmem>>, %arg8: memref<32x96xf32, #tpu.memory_space<vmem>>, %arg9: memref<1x96xf32, #tpu.memory_space<vmem>>, %arg10: memref<1x32xf32, #tpu.memory_space<vmem>>, %arg11: memref<1x32xf32, #tpu.memory_space<vmem>>, %arg12: memref<32x96xf32, #tpu.memory_space<vmem>>, %arg13: memref<1x96xf32, #tpu.memory_space<vmem>>, %arg14: memref<32x96xf32, #tpu.memory_space<vmem>>, %arg15: memref<1x96xf32, #tpu.memory_space<vmem>>, %arg16: memref<32x2xf32, #tpu.memory_space<vmem>>, %arg17: memref<1x2xf32, #tpu.memory_space<vmem>>, %arg18: memref<1x8x2x2xf32, #tpu.memory_space<vmem>>) attributes {dimension_semantics = [#tpu.dimension_semantics<parallel>], iteration_bounds = array<i64: 1>, scalar_prefetch = 0 : i64, scratch_operands = 0 : i64, tpu.core_type = #tpu.core_type<tc>, window_params = [{transform_indices = @transform_0, window_bounds = array<i64: 1, 8, 2, 64>}, {pipeline_mode = #tpu.pipeline_mode<synchronous>, transform_indices = @transform_1, window_bounds = array<i64: 64, 32>}, {pipeline_mode = #tpu.pipeline_mode<synchronous>, transform_indices = @transform_2, window_bounds = array<i64: 1, 32>}, {pipeline_mode = #tpu.pipeline_mode<synchronous>, transform_indices = @transform_3, window_bounds = array<i64: 1, 32>}, {pipeline_mode = #tpu.pipeline_mode<synchronous>, transform_indices = @transform_4, window_bounds = array<i64: 1, 32>}, {pipeline_mode = #tpu.pipeline_mode<synchronous>, transform_indices = @transform_5, window_bounds = array<i64: 32, 96>}, {pipeline_mode = #tpu.pipeline_mode<synchronous>, transform_indices = @transform_6, window_bounds = array<i64: 1, 96>}, {pipeline_mode = #tpu.pipeline_mode<synchronous>, transform_indices = @transform_7, window_bounds = array<i64: 32, 96>}, {pipeline_mode = #tpu.pipeline_mode<synchronous>, transform_indices = @transform_8, window_bounds = array<i64: 1, 96>}, {pipeline_mode = #tpu.pipeline_mode<synchronous>, transform_indices = @transform_9, window_bounds = array<i64: 1, 32>}, {pipeline_mode = #tpu.pipeline_mode<synchronous>, transform_indices = @transform_10, window_bounds = array<i64: 1, 32>}, {pipeline_mode = #tpu.pipeline_mode<synchronous>, transform_indices = @transform_11, window_bounds = array<i64: 32, 96>}, {pipeline_mode = #tpu.pipeline_mode<synchronous>, transform_indices = @transform_12, window_bounds = array<i64: 1, 96>}, {pipeline_mode = #tpu.pipeline_mode<synchronous>, transform_indices = @transform_13, window_bounds = array<i64: 32, 96>}, {pipeline_mode = #tpu.pipeline_mode<synchronous>, transform_indices = @transform_14, window_bounds = array<i64: 1, 96>}, {pipeline_mode = #tpu.pipeline_mode<synchronous>, transform_indices = @transform_15, window_bounds = array<i64: 32, 2>}, {pipeline_mode = #tpu.pipeline_mode<synchronous>, transform_indices = @transform_16, window_bounds = array<i64: 1, 2>}, {transform_indices = @transform_17, window_bounds = array<i64: 1, 8, 2, 2>}]} {
    %c0 = arith.constant 0 : index
    %c0_0 = arith.constant 0 : index
    %c0_1 = arith.constant 0 : index
    %c0_2 = arith.constant 0 : index
    %0 = vector.load %arg1[%c0, %c0_0, %c0_1, %c0_2] : memref<1x8x2x64xf32, #tpu.memory_space<vmem>>, vector<1x8x2x64xf32>
    %1 = vector.shape_cast %0 : vector<1x8x2x64xf32> to vector<8x2x64xf32>
    %2 = vector.shape_cast %1 : vector<8x2x64xf32> to vector<16x64xf32>
    %c0_3 = arith.constant 0 : index
    %c0_4 = arith.constant 0 : index
    %3 = vector.load %arg2[%c0_3, %c0_4] : memref<64x32xf32, #tpu.memory_space<vmem>>, vector<64x32xf32>
    %cst = arith.constant dense<0.000000e+00> : vector<16x32xf32>
    %4 = tpu.matmul %2, %3, %cst {dimension_numbers = #tpu.dot_dimension_numbers<[1], [0], [0], [1], [0, 0, 1, 1], [], []>} : vector<16x64xf32>, vector<64x32xf32>, vector<16x32xf32> -> vector<16x32xf32>
    %c0_5 = arith.constant 0 : index
    %c0_6 = arith.constant 0 : index
    %5 = vector.load %arg3[%c0_5, %c0_6] : memref<1x32xf32, #tpu.memory_space<vmem>>, vector<1x32xf32>
    %6 = vector.broadcast %5 : vector<1x32xf32> to vector<16x32xf32>
    %7 = arith.addf %4, %6 : vector<16x32xf32>
    %c0_7 = arith.constant 0 : index
    %c0_8 = arith.constant 0 : index
    %8 = vector.load %arg4[%c0_7, %c0_8] : memref<1x32xf32, #tpu.memory_space<vmem>>, vector<1x32xf32>
    %c0_9 = arith.constant 0 : index
    %c0_10 = arith.constant 0 : index
    %9 = vector.load %arg5[%c0_9, %c0_10] : memref<1x32xf32, #tpu.memory_space<vmem>>, vector<1x32xf32>
    %c0_11 = arith.constant 0 : index
    %c0_12 = arith.constant 0 : index
    %10 = vector.load %arg6[%c0_11, %c0_12] : memref<32x96xf32, #tpu.memory_space<vmem>>, vector<32x96xf32>
    %c0_13 = arith.constant 0 : index
    %c0_14 = arith.constant 0 : index
    %11 = vector.load %arg7[%c0_13, %c0_14] : memref<1x96xf32, #tpu.memory_space<vmem>>, vector<1x96xf32>
    %c0_15 = arith.constant 0 : index
    %c0_16 = arith.constant 0 : index
    %12 = vector.load %arg8[%c0_15, %c0_16] : memref<32x96xf32, #tpu.memory_space<vmem>>, vector<32x96xf32>
    %c0_17 = arith.constant 0 : index
    %c0_18 = arith.constant 0 : index
    %13 = vector.load %arg9[%c0_17, %c0_18] : memref<1x96xf32, #tpu.memory_space<vmem>>, vector<1x96xf32>
    %cst_19 = arith.constant dense<0.000000e+00> : vector<16xf32>
    %14 = vector.multi_reduction <add>, %7, %cst_19 [1] : vector<16x32xf32> to vector<16xf32>
    %15 = vector.shape_cast %14 : vector<16xf32> to vector<16x1xf32>
    %cst_20 = arith.constant 3.200000e+01 : f32
    %16 = vector.broadcast %cst_20 : f32 to vector<16x1xf32>
    %17 = arith.divf %15, %16 : vector<16x1xf32>
    %18 = vector.broadcast %17 : vector<16x1xf32> to vector<16x32xf32>
    %19 = arith.subf %7, %18 : vector<16x32xf32>
    %20 = arith.mulf %19, %19 : vector<16x32xf32>
    %cst_21 = arith.constant dense<0.000000e+00> : vector<16xf32>
    %21 = vector.multi_reduction <add>, %20, %cst_21 [1] : vector<16x32xf32> to vector<16xf32>
    %22 = vector.shape_cast %21 : vector<16xf32> to vector<16x1xf32>
    %cst_22 = arith.constant 3.200000e+01 : f32
    %23 = vector.broadcast %cst_22 : f32 to vector<16x1xf32>
    %24 = arith.divf %22, %23 : vector<16x1xf32>
    %cst_23 = arith.constant 9.99999974E-6 : f32
    %25 = vector.broadcast %cst_23 : f32 to vector<16x1xf32>
    %26 = arith.addf %24, %25 : vector<16x1xf32>
    %27 = math.rsqrt %26 : vector<16x1xf32>
    %28 = vector.broadcast %27 : vector<16x1xf32> to vector<16x32xf32>
    %29 = arith.mulf %19, %28 : vector<16x32xf32>
    %30 = vector.broadcast %8 : vector<1x32xf32> to vector<16x32xf32>
    %31 = arith.mulf %29, %30 : vector<16x32xf32>
    %32 = vector.broadcast %9 : vector<1x32xf32> to vector<16x32xf32>
    %33 = arith.addf %31, %32 : vector<16x32xf32>
    %cst_24 = arith.constant 5.000000e-01 : f32
    %34 = vector.broadcast %cst_24 : f32 to vector<16x32xf32>
    %35 = arith.mulf %34, %33 : vector<16x32xf32>
    %cst_25 = arith.constant 0.707106769 : f32
    %36 = vector.broadcast %cst_25 : f32 to vector<16x32xf32>
    %37 = arith.mulf %33, %36 : vector<16x32xf32>
    %38 = math.erf %37 : vector<16x32xf32>
    %cst_26 = arith.constant 1.000000e+00 : f32
    %39 = vector.broadcast %cst_26 : f32 to vector<16x32xf32>
    %40 = arith.addf %39, %38 : vector<16x32xf32>
    %41 = arith.mulf %35, %40 : vector<16x32xf32>
    %42 = tpu.iota {dimensions = array<i32: 1>} : vector<1x96xi32>
    %c64_i32 = arith.constant 64 : i32
    %43 = vector.broadcast %c64_i32 : i32 to vector<1x96xi32>
    %44 = arith.cmpi slt, %42, %43 : vector<1x96xi32>
    %cst_27 = arith.constant 0.000000e+00 : f32
    %45 = vector.broadcast %cst_27 : f32 to vector<1x96xf32>
    %46 = arith.select %44, %13, %45 : vector<1x96xi1>, vector<1x96xf32>
    %47 = arith.addf %11, %46 : vector<1x96xf32>
    %cst_28 = arith.constant dense<0.000000e+00> : vector<16x96xf32>
    %48 = tpu.matmul %41, %10, %cst_28 {dimension_numbers = #tpu.dot_dimension_numbers<[1], [0], [0], [1], [0, 0, 1, 1], [], []>} : vector<16x32xf32>, vector<32x96xf32>, vector<16x96xf32> -> vector<16x96xf32>
    %49 = vector.broadcast %47 : vector<1x96xf32> to vector<16x96xf32>
    %50 = arith.addf %48, %49 : vector<16x96xf32>
    %51 = vector.extract_strided_slice %13 {offsets = [0, 64], sizes = [1, 32], strides = [1, 1]} : vector<1x96xf32> to vector<1x32xf32>
    %52 = arith.truncf %12 : vector<32x96xf32> to vector<32x96xbf16>
    %53 = vector.extract_strided_slice %50 {offsets = [0, 0], sizes = [2, 96], strides = [1, 1]} : vector<16x96xf32> to vector<2x96xf32>
    %54 = vector.extract_strided_slice %50 {offsets = [2, 0], sizes = [2, 96], strides = [1, 1]} : vector<16x96xf32> to vector<2x96xf32>
    %55 = vector.extract_strided_slice %50 {offsets = [4, 0], sizes = [2, 96], strides = [1, 1]} : vector<16x96xf32> to vector<2x96xf32>
    %56 = vector.extract_strided_slice %50 {offsets = [6, 0], sizes = [2, 96], strides = [1, 1]} : vector<16x96xf32> to vector<2x96xf32>
    %57 = vector.extract_strided_slice %50 {offsets = [8, 0], sizes = [2, 96], strides = [1, 1]} : vector<16x96xf32> to vector<2x96xf32>
    %58 = vector.extract_strided_slice %50 {offsets = [10, 0], sizes = [2, 96], strides = [1, 1]} : vector<16x96xf32> to vector<2x96xf32>
    %59 = vector.extract_strided_slice %50 {offsets = [12, 0], sizes = [2, 96], strides = [1, 1]} : vector<16x96xf32> to vector<2x96xf32>
    %60 = vector.extract_strided_slice %50 {offsets = [14, 0], sizes = [2, 96], strides = [1, 1]} : vector<16x96xf32> to vector<2x96xf32>
    %61 = vector.extract_strided_slice %53 {offsets = [0, 64], sizes = [2, 32], strides = [1, 1]} : vector<2x96xf32> to vector<2x32xf32>
    %62 = vector.extract_strided_slice %54 {offsets = [0, 64], sizes = [2, 32], strides = [1, 1]} : vector<2x96xf32> to vector<2x32xf32>
    %63 = vector.extract_strided_slice %55 {offsets = [0, 64], sizes = [2, 32], strides = [1, 1]} : vector<2x96xf32> to vector<2x32xf32>
    %64 = vector.extract_strided_slice %56 {offsets = [0, 64], sizes = [2, 32], strides = [1, 1]} : vector<2x96xf32> to vector<2x32xf32>
    %65 = vector.extract_strided_slice %57 {offsets = [0, 64], sizes = [2, 32], strides = [1, 1]} : vector<2x96xf32> to vector<2x32xf32>
    %66 = vector.extract_strided_slice %58 {offsets = [0, 64], sizes = [2, 32], strides = [1, 1]} : vector<2x96xf32> to vector<2x32xf32>
    %67 = vector.extract_strided_slice %59 {offsets = [0, 64], sizes = [2, 32], strides = [1, 1]} : vector<2x96xf32> to vector<2x32xf32>
    %68 = vector.extract_strided_slice %60 {offsets = [0, 64], sizes = [2, 32], strides = [1, 1]} : vector<2x96xf32> to vector<2x32xf32>
    %cst_29 = arith.constant 0.000000e+00 : f32
    %69 = vector.broadcast %cst_29 : f32 to vector<2x32xf32>
    %70 = arith.truncf %69 : vector<2x32xf32> to vector<2x32xbf16>
    %cst_30 = arith.constant dense<0.000000e+00> : vector<2x96xf32>
    %71 = tpu.matmul %70, %52, %cst_30 {dimension_numbers = #tpu.dot_dimension_numbers<[1], [0], [0], [1], [0, 0, 1, 1], [], []>} : vector<2x32xbf16>, vector<32x96xbf16>, vector<2x96xf32> -> vector<2x96xf32>
    %72 = arith.addf %53, %71 : vector<2x96xf32>
    %73 = arith.negf %72 : vector<2x96xf32>
    %74 = math.exp %73 : vector<2x96xf32>
    %cst_31 = arith.constant 1.000000e+00 : f32
    %75 = vector.broadcast %cst_31 : f32 to vector<2x96xf32>
    %76 = arith.addf %75, %74 : vector<2x96xf32>
    %77 = arith.divf %75, %76 : vector<2x96xf32>
    %78 = vector.extract_strided_slice %77 {offsets = [0, 0], sizes = [2, 32], strides = [1, 1]} : vector<2x96xf32> to vector<2x32xf32>
    %79 = vector.extract_strided_slice %77 {offsets = [0, 32], sizes = [2, 32], strides = [1, 1]} : vector<2x96xf32> to vector<2x32xf32>
    %80 = vector.extract_strided_slice %71 {offsets = [0, 64], sizes = [2, 32], strides = [1, 1]} : vector<2x96xf32> to vector<2x32xf32>
    %81 = vector.broadcast %51 : vector<1x32xf32> to vector<2x32xf32>
    %82 = arith.addf %80, %81 : vector<2x32xf32>
    %83 = arith.mulf %78, %82 : vector<2x32xf32>
    %84 = arith.addf %61, %83 : vector<2x32xf32>
    %85 = math.tanh %84 : vector<2x32xf32>
    %cst_32 = arith.constant 1.000000e+00 : f32
    %86 = vector.broadcast %cst_32 : f32 to vector<2x32xf32>
    %87 = arith.subf %86, %79 : vector<2x32xf32>
    %88 = arith.mulf %87, %85 : vector<2x32xf32>
    %89 = arith.mulf %79, %69 : vector<2x32xf32>
    %90 = arith.addf %88, %89 : vector<2x32xf32>
    %91 = arith.truncf %90 : vector<2x32xf32> to vector<2x32xbf16>
    %cst_33 = arith.constant dense<0.000000e+00> : vector<2x96xf32>
    %92 = tpu.matmul %91, %52, %cst_33 {dimension_numbers = #tpu.dot_dimension_numbers<[1], [0], [0], [1], [0, 0, 1, 1], [], []>} : vector<2x32xbf16>, vector<32x96xbf16>, vector<2x96xf32> -> vector<2x96xf32>
    %93 = arith.addf %54, %92 : vector<2x96xf32>
    %94 = arith.negf %93 : vector<2x96xf32>
    %95 = math.exp %94 : vector<2x96xf32>
    %cst_34 = arith.constant 1.000000e+00 : f32
    %96 = vector.broadcast %cst_34 : f32 to vector<2x96xf32>
    %97 = arith.addf %96, %95 : vector<2x96xf32>
    %98 = arith.divf %96, %97 : vector<2x96xf32>
    %99 = vector.extract_strided_slice %98 {offsets = [0, 0], sizes = [2, 32], strides = [1, 1]} : vector<2x96xf32> to vector<2x32xf32>
    %100 = vector.extract_strided_slice %98 {offsets = [0, 32], sizes = [2, 32], strides = [1, 1]} : vector<2x96xf32> to vector<2x32xf32>
    %101 = vector.extract_strided_slice %92 {offsets = [0, 64], sizes = [2, 32], strides = [1, 1]} : vector<2x96xf32> to vector<2x32xf32>
    %102 = vector.broadcast %51 : vector<1x32xf32> to vector<2x32xf32>
    %103 = arith.addf %101, %102 : vector<2x32xf32>
    %104 = arith.mulf %99, %103 : vector<2x32xf32>
    %105 = arith.addf %62, %104 : vector<2x32xf32>
    %106 = math.tanh %105 : vector<2x32xf32>
    %cst_35 = arith.constant 1.000000e+00 : f32
    %107 = vector.broadcast %cst_35 : f32 to vector<2x32xf32>
    %108 = arith.subf %107, %100 : vector<2x32xf32>
    %109 = arith.mulf %108, %106 : vector<2x32xf32>
    %110 = arith.mulf %100, %90 : vector<2x32xf32>
    %111 = arith.addf %109, %110 : vector<2x32xf32>
    %112 = arith.truncf %111 : vector<2x32xf32> to vector<2x32xbf16>
    %cst_36 = arith.constant dense<0.000000e+00> : vector<2x96xf32>
    %113 = tpu.matmul %112, %52, %cst_36 {dimension_numbers = #tpu.dot_dimension_numbers<[1], [0], [0], [1], [0, 0, 1, 1], [], []>} : vector<2x32xbf16>, vector<32x96xbf16>, vector<2x96xf32> -> vector<2x96xf32>
    %114 = arith.addf %55, %113 : vector<2x96xf32>
    %115 = arith.negf %114 : vector<2x96xf32>
    %116 = math.exp %115 : vector<2x96xf32>
    %cst_37 = arith.constant 1.000000e+00 : f32
    %117 = vector.broadcast %cst_37 : f32 to vector<2x96xf32>
    %118 = arith.addf %117, %116 : vector<2x96xf32>
    %119 = arith.divf %117, %118 : vector<2x96xf32>
    %120 = vector.extract_strided_slice %119 {offsets = [0, 0], sizes = [2, 32], strides = [1, 1]} : vector<2x96xf32> to vector<2x32xf32>
    %121 = vector.extract_strided_slice %119 {offsets = [0, 32], sizes = [2, 32], strides = [1, 1]} : vector<2x96xf32> to vector<2x32xf32>
    %122 = vector.extract_strided_slice %113 {offsets = [0, 64], sizes = [2, 32], strides = [1, 1]} : vector<2x96xf32> to vector<2x32xf32>
    %123 = vector.broadcast %51 : vector<1x32xf32> to vector<2x32xf32>
    %124 = arith.addf %122, %123 : vector<2x32xf32>
    %125 = arith.mulf %120, %124 : vector<2x32xf32>
    %126 = arith.addf %63, %125 : vector<2x32xf32>
    %127 = math.tanh %126 : vector<2x32xf32>
    %cst_38 = arith.constant 1.000000e+00 : f32
    %128 = vector.broadcast %cst_38 : f32 to vector<2x32xf32>
    %129 = arith.subf %128, %121 : vector<2x32xf32>
    %130 = arith.mulf %129, %127 : vector<2x32xf32>
    %131 = arith.mulf %121, %111 : vector<2x32xf32>
    %132 = arith.addf %130, %131 : vector<2x32xf32>
    %133 = arith.truncf %132 : vector<2x32xf32> to vector<2x32xbf16>
    %cst_39 = arith.constant dense<0.000000e+00> : vector<2x96xf32>
    %134 = tpu.matmul %133, %52, %cst_39 {dimension_numbers = #tpu.dot_dimension_numbers<[1], [0], [0], [1], [0, 0, 1, 1], [], []>} : vector<2x32xbf16>, vector<32x96xbf16>, vector<2x96xf32> -> vector<2x96xf32>
    %135 = arith.addf %56, %134 : vector<2x96xf32>
    %136 = arith.negf %135 : vector<2x96xf32>
    %137 = math.exp %136 : vector<2x96xf32>
    %cst_40 = arith.constant 1.000000e+00 : f32
    %138 = vector.broadcast %cst_40 : f32 to vector<2x96xf32>
    %139 = arith.addf %138, %137 : vector<2x96xf32>
    %140 = arith.divf %138, %139 : vector<2x96xf32>
    %141 = vector.extract_strided_slice %140 {offsets = [0, 0], sizes = [2, 32], strides = [1, 1]} : vector<2x96xf32> to vector<2x32xf32>
    %142 = vector.extract_strided_slice %140 {offsets = [0, 32], sizes = [2, 32], strides = [1, 1]} : vector<2x96xf32> to vector<2x32xf32>
    %143 = vector.extract_strided_slice %134 {offsets = [0, 64], sizes = [2, 32], strides = [1, 1]} : vector<2x96xf32> to vector<2x32xf32>
    %144 = vector.broadcast %51 : vector<1x32xf32> to vector<2x32xf32>
    %145 = arith.addf %143, %144 : vector<2x32xf32>
    %146 = arith.mulf %141, %145 : vector<2x32xf32>
    %147 = arith.addf %64, %146 : vector<2x32xf32>
    %148 = math.tanh %147 : vector<2x32xf32>
    %cst_41 = arith.constant 1.000000e+00 : f32
    %149 = vector.broadcast %cst_41 : f32 to vector<2x32xf32>
    %150 = arith.subf %149, %142 : vector<2x32xf32>
    %151 = arith.mulf %150, %148 : vector<2x32xf32>
    %152 = arith.mulf %142, %132 : vector<2x32xf32>
    %153 = arith.addf %151, %152 : vector<2x32xf32>
    %154 = arith.truncf %153 : vector<2x32xf32> to vector<2x32xbf16>
    %cst_42 = arith.constant dense<0.000000e+00> : vector<2x96xf32>
    %155 = tpu.matmul %154, %52, %cst_42 {dimension_numbers = #tpu.dot_dimension_numbers<[1], [0], [0], [1], [0, 0, 1, 1], [], []>} : vector<2x32xbf16>, vector<32x96xbf16>, vector<2x96xf32> -> vector<2x96xf32>
    %156 = arith.addf %57, %155 : vector<2x96xf32>
    %157 = arith.negf %156 : vector<2x96xf32>
    %158 = math.exp %157 : vector<2x96xf32>
    %cst_43 = arith.constant 1.000000e+00 : f32
    %159 = vector.broadcast %cst_43 : f32 to vector<2x96xf32>
    %160 = arith.addf %159, %158 : vector<2x96xf32>
    %161 = arith.divf %159, %160 : vector<2x96xf32>
    %162 = vector.extract_strided_slice %161 {offsets = [0, 0], sizes = [2, 32], strides = [1, 1]} : vector<2x96xf32> to vector<2x32xf32>
    %163 = vector.extract_strided_slice %161 {offsets = [0, 32], sizes = [2, 32], strides = [1, 1]} : vector<2x96xf32> to vector<2x32xf32>
    %164 = vector.extract_strided_slice %155 {offsets = [0, 64], sizes = [2, 32], strides = [1, 1]} : vector<2x96xf32> to vector<2x32xf32>
    %165 = vector.broadcast %51 : vector<1x32xf32> to vector<2x32xf32>
    %166 = arith.addf %164, %165 : vector<2x32xf32>
    %167 = arith.mulf %162, %166 : vector<2x32xf32>
    %168 = arith.addf %65, %167 : vector<2x32xf32>
    %169 = math.tanh %168 : vector<2x32xf32>
    %cst_44 = arith.constant 1.000000e+00 : f32
    %170 = vector.broadcast %cst_44 : f32 to vector<2x32xf32>
    %171 = arith.subf %170, %163 : vector<2x32xf32>
    %172 = arith.mulf %171, %169 : vector<2x32xf32>
    %173 = arith.mulf %163, %153 : vector<2x32xf32>
    %174 = arith.addf %172, %173 : vector<2x32xf32>
    %175 = arith.truncf %174 : vector<2x32xf32> to vector<2x32xbf16>
    %cst_45 = arith.constant dense<0.000000e+00> : vector<2x96xf32>
    %176 = tpu.matmul %175, %52, %cst_45 {dimension_numbers = #tpu.dot_dimension_numbers<[1], [0], [0], [1], [0, 0, 1, 1], [], []>} : vector<2x32xbf16>, vector<32x96xbf16>, vector<2x96xf32> -> vector<2x96xf32>
    %177 = arith.addf %58, %176 : vector<2x96xf32>
    %178 = arith.negf %177 : vector<2x96xf32>
    %179 = math.exp %178 : vector<2x96xf32>
    %cst_46 = arith.constant 1.000000e+00 : f32
    %180 = vector.broadcast %cst_46 : f32 to vector<2x96xf32>
    %181 = arith.addf %180, %179 : vector<2x96xf32>
    %182 = arith.divf %180, %181 : vector<2x96xf32>
    %183 = vector.extract_strided_slice %182 {offsets = [0, 0], sizes = [2, 32], strides = [1, 1]} : vector<2x96xf32> to vector<2x32xf32>
    %184 = vector.extract_strided_slice %182 {offsets = [0, 32], sizes = [2, 32], strides = [1, 1]} : vector<2x96xf32> to vector<2x32xf32>
    %185 = vector.extract_strided_slice %176 {offsets = [0, 64], sizes = [2, 32], strides = [1, 1]} : vector<2x96xf32> to vector<2x32xf32>
    %186 = vector.broadcast %51 : vector<1x32xf32> to vector<2x32xf32>
    %187 = arith.addf %185, %186 : vector<2x32xf32>
    %188 = arith.mulf %183, %187 : vector<2x32xf32>
    %189 = arith.addf %66, %188 : vector<2x32xf32>
    %190 = math.tanh %189 : vector<2x32xf32>
    %cst_47 = arith.constant 1.000000e+00 : f32
    %191 = vector.broadcast %cst_47 : f32 to vector<2x32xf32>
    %192 = arith.subf %191, %184 : vector<2x32xf32>
    %193 = arith.mulf %192, %190 : vector<2x32xf32>
    %194 = arith.mulf %184, %174 : vector<2x32xf32>
    %195 = arith.addf %193, %194 : vector<2x32xf32>
    %196 = arith.truncf %195 : vector<2x32xf32> to vector<2x32xbf16>
    %cst_48 = arith.constant dense<0.000000e+00> : vector<2x96xf32>
    %197 = tpu.matmul %196, %52, %cst_48 {dimension_numbers = #tpu.dot_dimension_numbers<[1], [0], [0], [1], [0, 0, 1, 1], [], []>} : vector<2x32xbf16>, vector<32x96xbf16>, vector<2x96xf32> -> vector<2x96xf32>
    %198 = arith.addf %59, %197 : vector<2x96xf32>
    %199 = arith.negf %198 : vector<2x96xf32>
    %200 = math.exp %199 : vector<2x96xf32>
    %cst_49 = arith.constant 1.000000e+00 : f32
    %201 = vector.broadcast %cst_49 : f32 to vector<2x96xf32>
    %202 = arith.addf %201, %200 : vector<2x96xf32>
    %203 = arith.divf %201, %202 : vector<2x96xf32>
    %204 = vector.extract_strided_slice %203 {offsets = [0, 0], sizes = [2, 32], strides = [1, 1]} : vector<2x96xf32> to vector<2x32xf32>
    %205 = vector.extract_strided_slice %203 {offsets = [0, 32], sizes = [2, 32], strides = [1, 1]} : vector<2x96xf32> to vector<2x32xf32>
    %206 = vector.extract_strided_slice %197 {offsets = [0, 64], sizes = [2, 32], strides = [1, 1]} : vector<2x96xf32> to vector<2x32xf32>
    %207 = vector.broadcast %51 : vector<1x32xf32> to vector<2x32xf32>
    %208 = arith.addf %206, %207 : vector<2x32xf32>
    %209 = arith.mulf %204, %208 : vector<2x32xf32>
    %210 = arith.addf %67, %209 : vector<2x32xf32>
    %211 = math.tanh %210 : vector<2x32xf32>
    %cst_50 = arith.constant 1.000000e+00 : f32
    %212 = vector.broadcast %cst_50 : f32 to vector<2x32xf32>
    %213 = arith.subf %212, %205 : vector<2x32xf32>
    %214 = arith.mulf %213, %211 : vector<2x32xf32>
    %215 = arith.mulf %205, %195 : vector<2x32xf32>
    %216 = arith.addf %214, %215 : vector<2x32xf32>
    %217 = arith.truncf %216 : vector<2x32xf32> to vector<2x32xbf16>
    %cst_51 = arith.constant dense<0.000000e+00> : vector<2x96xf32>
    %218 = tpu.matmul %217, %52, %cst_51 {dimension_numbers = #tpu.dot_dimension_numbers<[1], [0], [0], [1], [0, 0, 1, 1], [], []>} : vector<2x32xbf16>, vector<32x96xbf16>, vector<2x96xf32> -> vector<2x96xf32>
    %219 = arith.addf %60, %218 : vector<2x96xf32>
    %220 = arith.negf %219 : vector<2x96xf32>
    %221 = math.exp %220 : vector<2x96xf32>
    %cst_52 = arith.constant 1.000000e+00 : f32
    %222 = vector.broadcast %cst_52 : f32 to vector<2x96xf32>
    %223 = arith.addf %222, %221 : vector<2x96xf32>
    %224 = arith.divf %222, %223 : vector<2x96xf32>
    %225 = vector.extract_strided_slice %224 {offsets = [0, 0], sizes = [2, 32], strides = [1, 1]} : vector<2x96xf32> to vector<2x32xf32>
    %226 = vector.extract_strided_slice %224 {offsets = [0, 32], sizes = [2, 32], strides = [1, 1]} : vector<2x96xf32> to vector<2x32xf32>
    %227 = vector.extract_strided_slice %218 {offsets = [0, 64], sizes = [2, 32], strides = [1, 1]} : vector<2x96xf32> to vector<2x32xf32>
    %228 = vector.broadcast %51 : vector<1x32xf32> to vector<2x32xf32>
    %229 = arith.addf %227, %228 : vector<2x32xf32>
    %230 = arith.mulf %225, %229 : vector<2x32xf32>
    %231 = arith.addf %68, %230 : vector<2x32xf32>
    %232 = math.tanh %231 : vector<2x32xf32>
    %cst_53 = arith.constant 1.000000e+00 : f32
    %233 = vector.broadcast %cst_53 : f32 to vector<2x32xf32>
    %234 = arith.subf %233, %226 : vector<2x32xf32>
    %235 = arith.mulf %234, %232 : vector<2x32xf32>
    %236 = arith.mulf %226, %216 : vector<2x32xf32>
    %237 = arith.addf %235, %236 : vector<2x32xf32>
    %238 = tpu.concatenate %90, %111, %132, %153, %174, %195, %216, %237 in 0 : vector<2x32xf32>, vector<2x32xf32>, vector<2x32xf32>, vector<2x32xf32>, vector<2x32xf32>, vector<2x32xf32>, vector<2x32xf32>, vector<2x32xf32> -> vector<16x32xf32>
    %c0_54 = arith.constant 0 : index
    %c0_55 = arith.constant 0 : index
    %239 = vector.load %arg10[%c0_54, %c0_55] : memref<1x32xf32, #tpu.memory_space<vmem>>, vector<1x32xf32>
    %c0_56 = arith.constant 0 : index
    %c0_57 = arith.constant 0 : index
    %240 = vector.load %arg11[%c0_56, %c0_57] : memref<1x32xf32, #tpu.memory_space<vmem>>, vector<1x32xf32>
    %c0_58 = arith.constant 0 : index
    %c0_59 = arith.constant 0 : index
    %241 = vector.load %arg12[%c0_58, %c0_59] : memref<32x96xf32, #tpu.memory_space<vmem>>, vector<32x96xf32>
    %c0_60 = arith.constant 0 : index
    %c0_61 = arith.constant 0 : index
    %242 = vector.load %arg13[%c0_60, %c0_61] : memref<1x96xf32, #tpu.memory_space<vmem>>, vector<1x96xf32>
    %c0_62 = arith.constant 0 : index
    %c0_63 = arith.constant 0 : index
    %243 = vector.load %arg14[%c0_62, %c0_63] : memref<32x96xf32, #tpu.memory_space<vmem>>, vector<32x96xf32>
    %c0_64 = arith.constant 0 : index
    %c0_65 = arith.constant 0 : index
    %244 = vector.load %arg15[%c0_64, %c0_65] : memref<1x96xf32, #tpu.memory_space<vmem>>, vector<1x96xf32>
    %cst_66 = arith.constant dense<0.000000e+00> : vector<16xf32>
    %245 = vector.multi_reduction <add>, %238, %cst_66 [1] : vector<16x32xf32> to vector<16xf32>
    %246 = vector.shape_cast %245 : vector<16xf32> to vector<16x1xf32>
    %cst_67 = arith.constant 3.200000e+01 : f32
    %247 = vector.broadcast %cst_67 : f32 to vector<16x1xf32>
    %248 = arith.divf %246, %247 : vector<16x1xf32>
    %249 = vector.broadcast %248 : vector<16x1xf32> to vector<16x32xf32>
    %250 = arith.subf %238, %249 : vector<16x32xf32>
    %251 = arith.mulf %250, %250 : vector<16x32xf32>
    %cst_68 = arith.constant dense<0.000000e+00> : vector<16xf32>
    %252 = vector.multi_reduction <add>, %251, %cst_68 [1] : vector<16x32xf32> to vector<16xf32>
    %253 = vector.shape_cast %252 : vector<16xf32> to vector<16x1xf32>
    %cst_69 = arith.constant 3.200000e+01 : f32
    %254 = vector.broadcast %cst_69 : f32 to vector<16x1xf32>
    %255 = arith.divf %253, %254 : vector<16x1xf32>
    %cst_70 = arith.constant 9.99999974E-6 : f32
    %256 = vector.broadcast %cst_70 : f32 to vector<16x1xf32>
    %257 = arith.addf %255, %256 : vector<16x1xf32>
    %258 = math.rsqrt %257 : vector<16x1xf32>
    %259 = vector.broadcast %258 : vector<16x1xf32> to vector<16x32xf32>
    %260 = arith.mulf %250, %259 : vector<16x32xf32>
    %261 = vector.broadcast %239 : vector<1x32xf32> to vector<16x32xf32>
    %262 = arith.mulf %260, %261 : vector<16x32xf32>
    %263 = vector.broadcast %240 : vector<1x32xf32> to vector<16x32xf32>
    %264 = arith.addf %262, %263 : vector<16x32xf32>
    %cst_71 = arith.constant 5.000000e-01 : f32
    %265 = vector.broadcast %cst_71 : f32 to vector<16x32xf32>
    %266 = arith.mulf %265, %264 : vector<16x32xf32>
    %cst_72 = arith.constant 0.707106769 : f32
    %267 = vector.broadcast %cst_72 : f32 to vector<16x32xf32>
    %268 = arith.mulf %264, %267 : vector<16x32xf32>
    %269 = math.erf %268 : vector<16x32xf32>
    %cst_73 = arith.constant 1.000000e+00 : f32
    %270 = vector.broadcast %cst_73 : f32 to vector<16x32xf32>
    %271 = arith.addf %270, %269 : vector<16x32xf32>
    %272 = arith.mulf %266, %271 : vector<16x32xf32>
    %273 = tpu.iota {dimensions = array<i32: 1>} : vector<1x96xi32>
    %c64_i32_74 = arith.constant 64 : i32
    %274 = vector.broadcast %c64_i32_74 : i32 to vector<1x96xi32>
    %275 = arith.cmpi slt, %273, %274 : vector<1x96xi32>
    %cst_75 = arith.constant 0.000000e+00 : f32
    %276 = vector.broadcast %cst_75 : f32 to vector<1x96xf32>
    %277 = arith.select %275, %244, %276 : vector<1x96xi1>, vector<1x96xf32>
    %278 = arith.addf %242, %277 : vector<1x96xf32>
    %cst_76 = arith.constant dense<0.000000e+00> : vector<16x96xf32>
    %279 = tpu.matmul %272, %241, %cst_76 {dimension_numbers = #tpu.dot_dimension_numbers<[1], [0], [0], [1], [0, 0, 1, 1], [], []>} : vector<16x32xf32>, vector<32x96xf32>, vector<16x96xf32> -> vector<16x96xf32>
    %280 = vector.broadcast %278 : vector<1x96xf32> to vector<16x96xf32>
    %281 = arith.addf %279, %280 : vector<16x96xf32>
    %282 = vector.extract_strided_slice %244 {offsets = [0, 64], sizes = [1, 32], strides = [1, 1]} : vector<1x96xf32> to vector<1x32xf32>
    %283 = arith.truncf %243 : vector<32x96xf32> to vector<32x96xbf16>
    %284 = vector.extract_strided_slice %281 {offsets = [0, 0], sizes = [2, 96], strides = [1, 1]} : vector<16x96xf32> to vector<2x96xf32>
    %285 = vector.extract_strided_slice %281 {offsets = [2, 0], sizes = [2, 96], strides = [1, 1]} : vector<16x96xf32> to vector<2x96xf32>
    %286 = vector.extract_strided_slice %281 {offsets = [4, 0], sizes = [2, 96], strides = [1, 1]} : vector<16x96xf32> to vector<2x96xf32>
    %287 = vector.extract_strided_slice %281 {offsets = [6, 0], sizes = [2, 96], strides = [1, 1]} : vector<16x96xf32> to vector<2x96xf32>
    %288 = vector.extract_strided_slice %281 {offsets = [8, 0], sizes = [2, 96], strides = [1, 1]} : vector<16x96xf32> to vector<2x96xf32>
    %289 = vector.extract_strided_slice %281 {offsets = [10, 0], sizes = [2, 96], strides = [1, 1]} : vector<16x96xf32> to vector<2x96xf32>
    %290 = vector.extract_strided_slice %281 {offsets = [12, 0], sizes = [2, 96], strides = [1, 1]} : vector<16x96xf32> to vector<2x96xf32>
    %291 = vector.extract_strided_slice %281 {offsets = [14, 0], sizes = [2, 96], strides = [1, 1]} : vector<16x96xf32> to vector<2x96xf32>
    %292 = vector.extract_strided_slice %284 {offsets = [0, 64], sizes = [2, 32], strides = [1, 1]} : vector<2x96xf32> to vector<2x32xf32>
    %293 = vector.extract_strided_slice %285 {offsets = [0, 64], sizes = [2, 32], strides = [1, 1]} : vector<2x96xf32> to vector<2x32xf32>
    %294 = vector.extract_strided_slice %286 {offsets = [0, 64], sizes = [2, 32], strides = [1, 1]} : vector<2x96xf32> to vector<2x32xf32>
    %295 = vector.extract_strided_slice %287 {offsets = [0, 64], sizes = [2, 32], strides = [1, 1]} : vector<2x96xf32> to vector<2x32xf32>
    %296 = vector.extract_strided_slice %288 {offsets = [0, 64], sizes = [2, 32], strides = [1, 1]} : vector<2x96xf32> to vector<2x32xf32>
    %297 = vector.extract_strided_slice %289 {offsets = [0, 64], sizes = [2, 32], strides = [1, 1]} : vector<2x96xf32> to vector<2x32xf32>
    %298 = vector.extract_strided_slice %290 {offsets = [0, 64], sizes = [2, 32], strides = [1, 1]} : vector<2x96xf32> to vector<2x32xf32>
    %299 = vector.extract_strided_slice %291 {offsets = [0, 64], sizes = [2, 32], strides = [1, 1]} : vector<2x96xf32> to vector<2x32xf32>
    %cst_77 = arith.constant 0.000000e+00 : f32
    %300 = vector.broadcast %cst_77 : f32 to vector<2x32xf32>
    %301 = arith.truncf %300 : vector<2x32xf32> to vector<2x32xbf16>
    %cst_78 = arith.constant dense<0.000000e+00> : vector<2x96xf32>
    %302 = tpu.matmul %301, %283, %cst_78 {dimension_numbers = #tpu.dot_dimension_numbers<[1], [0], [0], [1], [0, 0, 1, 1], [], []>} : vector<2x32xbf16>, vector<32x96xbf16>, vector<2x96xf32> -> vector<2x96xf32>
    %303 = arith.addf %284, %302 : vector<2x96xf32>
    %304 = arith.negf %303 : vector<2x96xf32>
    %305 = math.exp %304 : vector<2x96xf32>
    %cst_79 = arith.constant 1.000000e+00 : f32
    %306 = vector.broadcast %cst_79 : f32 to vector<2x96xf32>
    %307 = arith.addf %306, %305 : vector<2x96xf32>
    %308 = arith.divf %306, %307 : vector<2x96xf32>
    %309 = vector.extract_strided_slice %308 {offsets = [0, 0], sizes = [2, 32], strides = [1, 1]} : vector<2x96xf32> to vector<2x32xf32>
    %310 = vector.extract_strided_slice %308 {offsets = [0, 32], sizes = [2, 32], strides = [1, 1]} : vector<2x96xf32> to vector<2x32xf32>
    %311 = vector.extract_strided_slice %302 {offsets = [0, 64], sizes = [2, 32], strides = [1, 1]} : vector<2x96xf32> to vector<2x32xf32>
    %312 = vector.broadcast %282 : vector<1x32xf32> to vector<2x32xf32>
    %313 = arith.addf %311, %312 : vector<2x32xf32>
    %314 = arith.mulf %309, %313 : vector<2x32xf32>
    %315 = arith.addf %292, %314 : vector<2x32xf32>
    %316 = math.tanh %315 : vector<2x32xf32>
    %cst_80 = arith.constant 1.000000e+00 : f32
    %317 = vector.broadcast %cst_80 : f32 to vector<2x32xf32>
    %318 = arith.subf %317, %310 : vector<2x32xf32>
    %319 = arith.mulf %318, %316 : vector<2x32xf32>
    %320 = arith.mulf %310, %300 : vector<2x32xf32>
    %321 = arith.addf %319, %320 : vector<2x32xf32>
    %322 = arith.truncf %321 : vector<2x32xf32> to vector<2x32xbf16>
    %cst_81 = arith.constant dense<0.000000e+00> : vector<2x96xf32>
    %323 = tpu.matmul %322, %283, %cst_81 {dimension_numbers = #tpu.dot_dimension_numbers<[1], [0], [0], [1], [0, 0, 1, 1], [], []>} : vector<2x32xbf16>, vector<32x96xbf16>, vector<2x96xf32> -> vector<2x96xf32>
    %324 = arith.addf %285, %323 : vector<2x96xf32>
    %325 = arith.negf %324 : vector<2x96xf32>
    %326 = math.exp %325 : vector<2x96xf32>
    %cst_82 = arith.constant 1.000000e+00 : f32
    %327 = vector.broadcast %cst_82 : f32 to vector<2x96xf32>
    %328 = arith.addf %327, %326 : vector<2x96xf32>
    %329 = arith.divf %327, %328 : vector<2x96xf32>
    %330 = vector.extract_strided_slice %329 {offsets = [0, 0], sizes = [2, 32], strides = [1, 1]} : vector<2x96xf32> to vector<2x32xf32>
    %331 = vector.extract_strided_slice %329 {offsets = [0, 32], sizes = [2, 32], strides = [1, 1]} : vector<2x96xf32> to vector<2x32xf32>
    %332 = vector.extract_strided_slice %323 {offsets = [0, 64], sizes = [2, 32], strides = [1, 1]} : vector<2x96xf32> to vector<2x32xf32>
    %333 = vector.broadcast %282 : vector<1x32xf32> to vector<2x32xf32>
    %334 = arith.addf %332, %333 : vector<2x32xf32>
    %335 = arith.mulf %330, %334 : vector<2x32xf32>
    %336 = arith.addf %293, %335 : vector<2x32xf32>
    %337 = math.tanh %336 : vector<2x32xf32>
    %cst_83 = arith.constant 1.000000e+00 : f32
    %338 = vector.broadcast %cst_83 : f32 to vector<2x32xf32>
    %339 = arith.subf %338, %331 : vector<2x32xf32>
    %340 = arith.mulf %339, %337 : vector<2x32xf32>
    %341 = arith.mulf %331, %321 : vector<2x32xf32>
    %342 = arith.addf %340, %341 : vector<2x32xf32>
    %343 = arith.truncf %342 : vector<2x32xf32> to vector<2x32xbf16>
    %cst_84 = arith.constant dense<0.000000e+00> : vector<2x96xf32>
    %344 = tpu.matmul %343, %283, %cst_84 {dimension_numbers = #tpu.dot_dimension_numbers<[1], [0], [0], [1], [0, 0, 1, 1], [], []>} : vector<2x32xbf16>, vector<32x96xbf16>, vector<2x96xf32> -> vector<2x96xf32>
    %345 = arith.addf %286, %344 : vector<2x96xf32>
    %346 = arith.negf %345 : vector<2x96xf32>
    %347 = math.exp %346 : vector<2x96xf32>
    %cst_85 = arith.constant 1.000000e+00 : f32
    %348 = vector.broadcast %cst_85 : f32 to vector<2x96xf32>
    %349 = arith.addf %348, %347 : vector<2x96xf32>
    %350 = arith.divf %348, %349 : vector<2x96xf32>
    %351 = vector.extract_strided_slice %350 {offsets = [0, 0], sizes = [2, 32], strides = [1, 1]} : vector<2x96xf32> to vector<2x32xf32>
    %352 = vector.extract_strided_slice %350 {offsets = [0, 32], sizes = [2, 32], strides = [1, 1]} : vector<2x96xf32> to vector<2x32xf32>
    %353 = vector.extract_strided_slice %344 {offsets = [0, 64], sizes = [2, 32], strides = [1, 1]} : vector<2x96xf32> to vector<2x32xf32>
    %354 = vector.broadcast %282 : vector<1x32xf32> to vector<2x32xf32>
    %355 = arith.addf %353, %354 : vector<2x32xf32>
    %356 = arith.mulf %351, %355 : vector<2x32xf32>
    %357 = arith.addf %294, %356 : vector<2x32xf32>
    %358 = math.tanh %357 : vector<2x32xf32>
    %cst_86 = arith.constant 1.000000e+00 : f32
    %359 = vector.broadcast %cst_86 : f32 to vector<2x32xf32>
    %360 = arith.subf %359, %352 : vector<2x32xf32>
    %361 = arith.mulf %360, %358 : vector<2x32xf32>
    %362 = arith.mulf %352, %342 : vector<2x32xf32>
    %363 = arith.addf %361, %362 : vector<2x32xf32>
    %364 = arith.truncf %363 : vector<2x32xf32> to vector<2x32xbf16>
    %cst_87 = arith.constant dense<0.000000e+00> : vector<2x96xf32>
    %365 = tpu.matmul %364, %283, %cst_87 {dimension_numbers = #tpu.dot_dimension_numbers<[1], [0], [0], [1], [0, 0, 1, 1], [], []>} : vector<2x32xbf16>, vector<32x96xbf16>, vector<2x96xf32> -> vector<2x96xf32>
    %366 = arith.addf %287, %365 : vector<2x96xf32>
    %367 = arith.negf %366 : vector<2x96xf32>
    %368 = math.exp %367 : vector<2x96xf32>
    %cst_88 = arith.constant 1.000000e+00 : f32
    %369 = vector.broadcast %cst_88 : f32 to vector<2x96xf32>
    %370 = arith.addf %369, %368 : vector<2x96xf32>
    %371 = arith.divf %369, %370 : vector<2x96xf32>
    %372 = vector.extract_strided_slice %371 {offsets = [0, 0], sizes = [2, 32], strides = [1, 1]} : vector<2x96xf32> to vector<2x32xf32>
    %373 = vector.extract_strided_slice %371 {offsets = [0, 32], sizes = [2, 32], strides = [1, 1]} : vector<2x96xf32> to vector<2x32xf32>
    %374 = vector.extract_strided_slice %365 {offsets = [0, 64], sizes = [2, 32], strides = [1, 1]} : vector<2x96xf32> to vector<2x32xf32>
    %375 = vector.broadcast %282 : vector<1x32xf32> to vector<2x32xf32>
    %376 = arith.addf %374, %375 : vector<2x32xf32>
    %377 = arith.mulf %372, %376 : vector<2x32xf32>
    %378 = arith.addf %295, %377 : vector<2x32xf32>
    %379 = math.tanh %378 : vector<2x32xf32>
    %cst_89 = arith.constant 1.000000e+00 : f32
    %380 = vector.broadcast %cst_89 : f32 to vector<2x32xf32>
    %381 = arith.subf %380, %373 : vector<2x32xf32>
    %382 = arith.mulf %381, %379 : vector<2x32xf32>
    %383 = arith.mulf %373, %363 : vector<2x32xf32>
    %384 = arith.addf %382, %383 : vector<2x32xf32>
    %385 = arith.truncf %384 : vector<2x32xf32> to vector<2x32xbf16>
    %cst_90 = arith.constant dense<0.000000e+00> : vector<2x96xf32>
    %386 = tpu.matmul %385, %283, %cst_90 {dimension_numbers = #tpu.dot_dimension_numbers<[1], [0], [0], [1], [0, 0, 1, 1], [], []>} : vector<2x32xbf16>, vector<32x96xbf16>, vector<2x96xf32> -> vector<2x96xf32>
    %387 = arith.addf %288, %386 : vector<2x96xf32>
    %388 = arith.negf %387 : vector<2x96xf32>
    %389 = math.exp %388 : vector<2x96xf32>
    %cst_91 = arith.constant 1.000000e+00 : f32
    %390 = vector.broadcast %cst_91 : f32 to vector<2x96xf32>
    %391 = arith.addf %390, %389 : vector<2x96xf32>
    %392 = arith.divf %390, %391 : vector<2x96xf32>
    %393 = vector.extract_strided_slice %392 {offsets = [0, 0], sizes = [2, 32], strides = [1, 1]} : vector<2x96xf32> to vector<2x32xf32>
    %394 = vector.extract_strided_slice %392 {offsets = [0, 32], sizes = [2, 32], strides = [1, 1]} : vector<2x96xf32> to vector<2x32xf32>
    %395 = vector.extract_strided_slice %386 {offsets = [0, 64], sizes = [2, 32], strides = [1, 1]} : vector<2x96xf32> to vector<2x32xf32>
    %396 = vector.broadcast %282 : vector<1x32xf32> to vector<2x32xf32>
    %397 = arith.addf %395, %396 : vector<2x32xf32>
    %398 = arith.mulf %393, %397 : vector<2x32xf32>
    %399 = arith.addf %296, %398 : vector<2x32xf32>
    %400 = math.tanh %399 : vector<2x32xf32>
    %cst_92 = arith.constant 1.000000e+00 : f32
    %401 = vector.broadcast %cst_92 : f32 to vector<2x32xf32>
    %402 = arith.subf %401, %394 : vector<2x32xf32>
    %403 = arith.mulf %402, %400 : vector<2x32xf32>
    %404 = arith.mulf %394, %384 : vector<2x32xf32>
    %405 = arith.addf %403, %404 : vector<2x32xf32>
    %406 = arith.truncf %405 : vector<2x32xf32> to vector<2x32xbf16>
    %cst_93 = arith.constant dense<0.000000e+00> : vector<2x96xf32>
    %407 = tpu.matmul %406, %283, %cst_93 {dimension_numbers = #tpu.dot_dimension_numbers<[1], [0], [0], [1], [0, 0, 1, 1], [], []>} : vector<2x32xbf16>, vector<32x96xbf16>, vector<2x96xf32> -> vector<2x96xf32>
    %408 = arith.addf %289, %407 : vector<2x96xf32>
    %409 = arith.negf %408 : vector<2x96xf32>
    %410 = math.exp %409 : vector<2x96xf32>
    %cst_94 = arith.constant 1.000000e+00 : f32
    %411 = vector.broadcast %cst_94 : f32 to vector<2x96xf32>
    %412 = arith.addf %411, %410 : vector<2x96xf32>
    %413 = arith.divf %411, %412 : vector<2x96xf32>
    %414 = vector.extract_strided_slice %413 {offsets = [0, 0], sizes = [2, 32], strides = [1, 1]} : vector<2x96xf32> to vector<2x32xf32>
    %415 = vector.extract_strided_slice %413 {offsets = [0, 32], sizes = [2, 32], strides = [1, 1]} : vector<2x96xf32> to vector<2x32xf32>
    %416 = vector.extract_strided_slice %407 {offsets = [0, 64], sizes = [2, 32], strides = [1, 1]} : vector<2x96xf32> to vector<2x32xf32>
    %417 = vector.broadcast %282 : vector<1x32xf32> to vector<2x32xf32>
    %418 = arith.addf %416, %417 : vector<2x32xf32>
    %419 = arith.mulf %414, %418 : vector<2x32xf32>
    %420 = arith.addf %297, %419 : vector<2x32xf32>
    %421 = math.tanh %420 : vector<2x32xf32>
    %cst_95 = arith.constant 1.000000e+00 : f32
    %422 = vector.broadcast %cst_95 : f32 to vector<2x32xf32>
    %423 = arith.subf %422, %415 : vector<2x32xf32>
    %424 = arith.mulf %423, %421 : vector<2x32xf32>
    %425 = arith.mulf %415, %405 : vector<2x32xf32>
    %426 = arith.addf %424, %425 : vector<2x32xf32>
    %427 = arith.truncf %426 : vector<2x32xf32> to vector<2x32xbf16>
    %cst_96 = arith.constant dense<0.000000e+00> : vector<2x96xf32>
    %428 = tpu.matmul %427, %283, %cst_96 {dimension_numbers = #tpu.dot_dimension_numbers<[1], [0], [0], [1], [0, 0, 1, 1], [], []>} : vector<2x32xbf16>, vector<32x96xbf16>, vector<2x96xf32> -> vector<2x96xf32>
    %429 = arith.addf %290, %428 : vector<2x96xf32>
    %430 = arith.negf %429 : vector<2x96xf32>
    %431 = math.exp %430 : vector<2x96xf32>
    %cst_97 = arith.constant 1.000000e+00 : f32
    %432 = vector.broadcast %cst_97 : f32 to vector<2x96xf32>
    %433 = arith.addf %432, %431 : vector<2x96xf32>
    %434 = arith.divf %432, %433 : vector<2x96xf32>
    %435 = vector.extract_strided_slice %434 {offsets = [0, 0], sizes = [2, 32], strides = [1, 1]} : vector<2x96xf32> to vector<2x32xf32>
    %436 = vector.extract_strided_slice %434 {offsets = [0, 32], sizes = [2, 32], strides = [1, 1]} : vector<2x96xf32> to vector<2x32xf32>
    %437 = vector.extract_strided_slice %428 {offsets = [0, 64], sizes = [2, 32], strides = [1, 1]} : vector<2x96xf32> to vector<2x32xf32>
    %438 = vector.broadcast %282 : vector<1x32xf32> to vector<2x32xf32>
    %439 = arith.addf %437, %438 : vector<2x32xf32>
    %440 = arith.mulf %435, %439 : vector<2x32xf32>
    %441 = arith.addf %298, %440 : vector<2x32xf32>
    %442 = math.tanh %441 : vector<2x32xf32>
    %cst_98 = arith.constant 1.000000e+00 : f32
    %443 = vector.broadcast %cst_98 : f32 to vector<2x32xf32>
    %444 = arith.subf %443, %436 : vector<2x32xf32>
    %445 = arith.mulf %444, %442 : vector<2x32xf32>
    %446 = arith.mulf %436, %426 : vector<2x32xf32>
    %447 = arith.addf %445, %446 : vector<2x32xf32>
    %448 = arith.truncf %447 : vector<2x32xf32> to vector<2x32xbf16>
    %cst_99 = arith.constant dense<0.000000e+00> : vector<2x96xf32>
    %449 = tpu.matmul %448, %283, %cst_99 {dimension_numbers = #tpu.dot_dimension_numbers<[1], [0], [0], [1], [0, 0, 1, 1], [], []>} : vector<2x32xbf16>, vector<32x96xbf16>, vector<2x96xf32> -> vector<2x96xf32>
    %450 = arith.addf %291, %449 : vector<2x96xf32>
    %451 = arith.negf %450 : vector<2x96xf32>
    %452 = math.exp %451 : vector<2x96xf32>
    %cst_100 = arith.constant 1.000000e+00 : f32
    %453 = vector.broadcast %cst_100 : f32 to vector<2x96xf32>
    %454 = arith.addf %453, %452 : vector<2x96xf32>
    %455 = arith.divf %453, %454 : vector<2x96xf32>
    %456 = vector.extract_strided_slice %455 {offsets = [0, 0], sizes = [2, 32], strides = [1, 1]} : vector<2x96xf32> to vector<2x32xf32>
    %457 = vector.extract_strided_slice %455 {offsets = [0, 32], sizes = [2, 32], strides = [1, 1]} : vector<2x96xf32> to vector<2x32xf32>
    %458 = vector.extract_strided_slice %449 {offsets = [0, 64], sizes = [2, 32], strides = [1, 1]} : vector<2x96xf32> to vector<2x32xf32>
    %459 = vector.broadcast %282 : vector<1x32xf32> to vector<2x32xf32>
    %460 = arith.addf %458, %459 : vector<2x32xf32>
    %461 = arith.mulf %456, %460 : vector<2x32xf32>
    %462 = arith.addf %299, %461 : vector<2x32xf32>
    %463 = math.tanh %462 : vector<2x32xf32>
    %cst_101 = arith.constant 1.000000e+00 : f32
    %464 = vector.broadcast %cst_101 : f32 to vector<2x32xf32>
    %465 = arith.subf %464, %457 : vector<2x32xf32>
    %466 = arith.mulf %465, %463 : vector<2x32xf32>
    %467 = arith.mulf %457, %447 : vector<2x32xf32>
    %468 = arith.addf %466, %467 : vector<2x32xf32>
    %469 = tpu.concatenate %321, %342, %363, %384, %405, %426, %447, %468 in 0 : vector<2x32xf32>, vector<2x32xf32>, vector<2x32xf32>, vector<2x32xf32>, vector<2x32xf32>, vector<2x32xf32>, vector<2x32xf32>, vector<2x32xf32> -> vector<16x32xf32>
    %c0_102 = arith.constant 0 : index
    %c0_103 = arith.constant 0 : index
    %470 = vector.load %arg16[%c0_102, %c0_103] : memref<32x2xf32, #tpu.memory_space<vmem>>, vector<32x2xf32>
    %cst_104 = arith.constant dense<0.000000e+00> : vector<16x2xf32>
    %471 = tpu.matmul %469, %470, %cst_104 {dimension_numbers = #tpu.dot_dimension_numbers<[1], [0], [0], [1], [0, 0, 1, 1], [], []>} : vector<16x32xf32>, vector<32x2xf32>, vector<16x2xf32> -> vector<16x2xf32>
    %c0_105 = arith.constant 0 : index
    %c0_106 = arith.constant 0 : index
    %472 = vector.load %arg17[%c0_105, %c0_106] : memref<1x2xf32, #tpu.memory_space<vmem>>, vector<1x2xf32>
    %473 = vector.broadcast %472 : vector<1x2xf32> to vector<16x2xf32>
    %474 = arith.addf %471, %473 : vector<16x2xf32>
    %475 = vector.shape_cast %474 : vector<16x2xf32> to vector<8x2x2xf32>
    %c0_107 = arith.constant 0 : index
    %c0_108 = arith.constant 0 : index
    %c0_109 = arith.constant 0 : index
    %c0_110 = arith.constant 0 : index
    %476 = vector.load %arg18[%c0_107, %c0_108, %c0_109, %c0_110] : memref<1x8x2x2xf32, #tpu.memory_space<vmem>>, vector<1x8x2x2xf32>
    %477 = vector.shape_cast %476 : vector<1x8x2x2xf32> to vector<8x2x2xf32>
    %478 = vector.shape_cast %475 : vector<8x2x2xf32> to vector<1x8x2x2xf32>
    tpu.vector_store %arg18[%c0_107, %c0_108, %c0_109, %c0_110], %478 {strides = array<i32>} : memref<1x8x2x2xf32, #tpu.memory_space<vmem>>, vector<1x8x2x2xf32>,
    return
  }
  func.func @transform_0(%arg0: i32) -> (i32, i32, i32, i32) {
    %c0_i32 = arith.constant 0 : i32
    %c0_i32_0 = arith.constant 0 : i32
    %c0_i32_1 = arith.constant 0 : i32
    %c0_i32_2 = arith.constant 0 : i32
    return %arg0, %c0_i32, %c0_i32_0, %c0_i32_1 : i32, i32, i32, i32
  }
  func.func @transform_1(%arg0: i32) -> (i32, i32) {
    %c0_i32 = arith.constant 0 : i32
    %c0_i32_0 = arith.constant 0 : i32
    %c0_i32_1 = arith.constant 0 : i32
    return %c0_i32, %c0_i32_0 : i32, i32
  }
  func.func @transform_2(%arg0: i32) -> (i32, i32) {
    %c0_i32 = arith.constant 0 : i32
    %c0_i32_0 = arith.constant 0 : i32
    %c0_i32_1 = arith.constant 0 : i32
    return %c0_i32, %c0_i32_0 : i32, i32
  }
  func.func @transform_3(%arg0: i32) -> (i32, i32) {
    %c0_i32 = arith.constant 0 : i32
    %c0_i32_0 = arith.constant 0 : i32
    %c0_i32_1 = arith.constant 0 : i32
    return %c0_i32, %c0_i32_0 : i32, i32
  }
  func.func @transform_4(%arg0: i32) -> (i32, i32) {
    %c0_i32 = arith.constant 0 : i32
    %c0_i32_0 = arith.constant 0 : i32
    %c0_i32_1 = arith.constant 0 : i32
    return %c0_i32, %c0_i32_0 : i32, i32
  }
  func.func @transform_5(%arg0: i32) -> (i32, i32) {
    %c0_i32 = arith.constant 0 : i32
    %c0_i32_0 = arith.constant 0 : i32
    %c0_i32_1 = arith.constant 0 : i32
    return %c0_i32, %c0_i32_0 : i32, i32
  }
  func.func @transform_6(%arg0: i32) -> (i32, i32) {
    %c0_i32 = arith.constant 0 : i32
    %c0_i32_0 = arith.constant 0 : i32
    %c0_i32_1 = arith.constant 0 : i32
    return %c0_i32, %c0_i32_0 : i32, i32
  }
  func.func @transform_7(%arg0: i32) -> (i32, i32) {
    %c0_i32 = arith.constant 0 : i32
    %c0_i32_0 = arith.constant 0 : i32
    %c0_i32_1 = arith.constant 0 : i32
    return %c0_i32, %c0_i32_0 : i32, i32
  }
  func.func @transform_8(%arg0: i32) -> (i32, i32) {
    %c0_i32 = arith.constant 0 : i32
    %c0_i32_0 = arith.constant 0 : i32
    %c0_i32_1 = arith.constant 0 : i32
    return %c0_i32, %c0_i32_0 : i32, i32
  }
  func.func @transform_9(%arg0: i32) -> (i32, i32) {
    %c0_i32 = arith.constant 0 : i32
    %c0_i32_0 = arith.constant 0 : i32
    %c0_i32_1 = arith.constant 0 : i32
    return %c0_i32, %c0_i32_0 : i32, i32
  }
  func.func @transform_10(%arg0: i32) -> (i32, i32) {
    %c0_i32 = arith.constant 0 : i32
    %c0_i32_0 = arith.constant 0 : i32
    %c0_i32_1 = arith.constant 0 : i32
    return %c0_i32, %c0_i32_0 : i32, i32
  }
  func.func @transform_11(%arg0: i32) -> (i32, i32) {
    %c0_i32 = arith.constant 0 : i32
    %c0_i32_0 = arith.constant 0 : i32
    %c0_i32_1 = arith.constant 0 : i32
    return %c0_i32, %c0_i32_0 : i32, i32
  }
  func.func @transform_12(%arg0: i32) -> (i32, i32) {
    %c0_i32 = arith.constant 0 : i32
    %c0_i32_0 = arith.constant 0 : i32
    %c0_i32_1 = arith.constant 0 : i32
    return %c0_i32, %c0_i32_0 : i32, i32
  }
  func.func @transform_13(%arg0: i32) -> (i32, i32) {
    %c0_i32 = arith.constant 0 : i32
    %c0_i32_0 = arith.constant 0 : i32
    %c0_i32_1 = arith.constant 0 : i32
    return %c0_i32, %c0_i32_0 : i32, i32
  }
  func.func @transform_14(%arg0: i32) -> (i32, i32) {
    %c0_i32 = arith.constant 0 : i32
    %c0_i32_0 = arith.constant 0 : i32
    %c0_i32_1 = arith.constant 0 : i32
    return %c0_i32, %c0_i32_0 : i32, i32
  }
  func.func @transform_15(%arg0: i32) -> (i32, i32) {
    %c0_i32 = arith.constant 0 : i32
    %c0_i32_0 = arith.constant 0 : i32
    %c0_i32_1 = arith.constant 0 : i32
    return %c0_i32, %c0_i32_0 : i32, i32
  }
  func.func @transform_16(%arg0: i32) -> (i32, i32) {
    %c0_i32 = arith.constant 0 : i32
    %c0_i32_0 = arith.constant 0 : i32
    %c0_i32_1 = arith.constant 0 : i32
    return %c0_i32, %c0_i32_0 : i32, i32
  }
  func.func @transform_17(%arg0: i32) -> (i32, i32, i32, i32) {
    %c0_i32 = arith.constant 0 : i32
    %c0_i32_0 = arith.constant 0 : i32
    %c0_i32_1 = arith.constant 0 : i32
    %c0_i32_2 = arith.constant 0 : i32
    return %arg0, %c0_i32, %c0_i32_0, %c0_i32_1 : i32, i32, i32, i32
  }
}

</mosaic_0001>

<bundles_post_ra>
// kernel: model_gru_forward.1
= control target key start
LH: loop header
LB: loop body
LE: loop exit
PB: predicated region body
PF: predicated region fallthrough
CT: control target
= control target key end

     0   :  { %s3104_s0 = inlined_call_operand.vmem [shape: f32[1,8,2,64], index: 0, kind: input, shape index: {}]   ;;  %s3105_s1 = inlined_call_operand.vmem [shape: f32[64,32], index: 1, kind: input, shape index: {}]   ;;  %s3106_s2 = inlined_call_operand.vmem [shape: f32[1,32], index: 2, kind: input, shape index: {}]   ;;  %s3107_s3 = inlined_call_operand.vmem [shape: f32[1,32], index: 3, kind: input, shape index: {}]   ;;  %s3108_s4 = inlined_call_operand.vmem [shape: f32[1,32], index: 4, kind: input, shape index: {}]   ;;  %s3109_s5 = inlined_call_operand.vmem [shape: f32[32,96], index: 5, kind: input, shape index: {}]   ;;  %s3110_s6 = inlined_call_operand.vmem [shape: f32[1,96], index: 6, kind: input, shape index: {}]   ;;  %s3111_s7 = inlined_call_operand.vmem [shape: f32[32,96], index: 7, kind: input, shape index: {}]   ;;  %s3112_s8 = inlined_call_operand.vmem [shape: f32[1,96], index: 8, kind: input, shape index: {}]   ;;  %s3113_s9 = inlined_call_operand.vmem [shape: f32[1,32], index: 9, kind: input, shape index: {}]   ;;  %s3114_s10 = inlined_call_operand.vmem [shape: f32[1,32], index: 10, kind: input, shape index: {}]   ;;  %s3115_s11 = inlined_call_operand.vmem [shape: f32[32,96], index: 11, kind: input, shape index: {}]   ;;  %s3116_s12 = inlined_call_operand.vmem [shape: f32[1,96], index: 12, kind: input, shape index: {}]   ;;  %s3117_s13 = inlined_call_operand.vmem [shape: f32[32,96], index: 13, kind: input, shape index: {}]   ;;  %s3118_s14 = inlined_call_operand.vmem [shape: f32[1,96], index: 14, kind: input, shape index: {}]   ;;  %s3119_s15 = inlined_call_operand.vmem [shape: f32[32,2], index: 15, kind: input, shape index: {}]   ;;  %s3120_s16 = inlined_call_operand.hbm [shape: f32[1,2], index: 16, kind: input, shape index: {}]   ;;  %s3121_s17 = inlined_call_operand.vmem [shape: f32[1,8,2,2], index: 17, kind: output, shape index: {}]  }
   0x1   :  { %3124 = sst [smem:[#allocation5_spill]] %s3104_s0 }
   0x2   :  { %3125 = sst [smem:[#allocation6_spill]] %s3105_s1 }
   0x3   :  { %22 = vsyncpa [#allocation3], 0  ;;  %s2491_s24 = smov [#allocation2]   ;;  %s2467_s28 = scalar_lea.hbm %s3120_s16, 16 }
   0x4   :  { %s61_s25 = sshll.u32 %s2491_s24, 4  ;;  %p2468_p0 = scmp.ne.s32.totalorder %s3120_s16, %s2467_s28  ;;  %s62_s25 = int_to_ptr.vmem [resolvable:$true] %s61_s25 }
   0x5   :  { %p2471_p1 = scmp.lt.u32.totalorder %s2467_s28, %s3120_s16 }
   0x7   :  { %p2473_p2 = pnand %p2471_p1, %p2468_p0 }
   0x9   :  { %2476 = shalt.err (!%p2473_p2)
}
   0xa   :  { %s2477_s19 = scalar_lea.vmem %s62_s25, 16  ;;  %s2481_s1 = scalar_lea.vmem %s62_s25, 32 }
   0xb   :  { %p2478_p3 = scmp.ne.s32.totalorder %s62_s25, %s2477_s19  ;;  %p2482_p4 = scmp.lt.s32.totalorder %s62_s25, %s62_s25 }
   0xc   :  { %p2483_p5 = scmp.lt.s32.totalorder %s2481_s1, %s2477_s19 }
   0xe   :  { %p2484_p6 = por %p2483_p5, %p2482_p4 }
  0x10   :  { %p2485_p7 = pnand %p2484_p6, %p2478_p3 }
  0x12   :  { %2488 = shalt.err (!%p2485_p7)
}
  0x13   :  { %64 = dma.hbm_to_vmem [thread:$0]  %s3120_s16, 16, %s62_s25, [#allocation3]  }
  0x14   :  { %2489 = dma.done.wait [#allocation3], 16  }
  0x15   :  { %2490 = vsyncadd [#allocation3], 4294967280  ;;  %v2492_v0 = vmov 1983009808   ;;  %v105_v2 = vlaneseq  ;;  %s3126_s24 = sld [smem:[#allocation6_spill]]  ;;  %s3127_s21 = sld [smem:[#allocation5_spill]] }
  0x16   :  { %v103_v1 = vunpack.c.l.s4 %v2492_v0  ;;  %vm134_vm0 = vcmask 523264   ;;  %v2007_v36 = vld [vmem:[%s3106_s2] ss:$0 sm:$0xff]  ;;  %vm226_vm1 = vcmask 261120   ;;  %v217_v54 = vld [vmem:[%s3109_s5 + $0x8] sm:$0xff]  ;;  %v218_v55 = vld [vmem:[%s3109_s5 + $0x10] sm:$0xff] }
  0x17   :  { %v2602_v4 = vshrl.u32 %v105_v2, 7  ;;  %v216_v53 = vld [vmem:[%s3109_s5] sm:$0xff]  ;;  %v219_v57 = vld [vmem:[%s3109_s5 + $0x18] sm:$0xff]  ;;  %v2493_v59 = vmov 0.0   ;;  %v222_v61 = vld [vmem:[%s3111_s7 + $0x8] sm:$0xff]  ;;  %vm2494_vm2 = vmmov 0  }
  0x18   :  { %v104_v3 = vunpack.c.0.s8 %v103_v1  ;;  %v2323_v56 = vpack.c.bf16 %v217_v54, %v216_v53  ;;  %v2327_v58 = vpack.c.bf16 %v219_v57, %v218_v55  ;;  %v221_v60 = vld [vmem:[%s3111_s7] sm:$0xff]  ;;  %v223_v63 = vld [vmem:[%s3111_s7 + $0x10] sm:$0xff]  ;;  %v224_v0 = vld [vmem:[%s3111_s7 + $0x18] sm:$0xff]  ;;  %vm1018_vm4 = vcmask 1041408   ;;  %s2498_s0 = smov 32  }
  0x19   :  { %v2686_v62 = vpack.c.bf16 %v222_v61, %v221_v60  ;;  %v2696_v1 = vpack.c.bf16 %v224_v0, %v223_v63  ;;  %vm1020_vm5 = vcmask 1043456   ;;  %vm1022_vm6 = vcmask 1045504  }
  0x1a   :  { %v2626_v14 = vsub.s32 %v104_v3, %v2602_v4  ;;  %2324 = vmatprep.subr.bf16.mxu1 %v2323_v56  ;;  %vm1993_vm7 = vcmask 9216  }
  0x1b   :  { %v77_v5 = vld [vmem:[%s3126_s24] sm:$0xff]  ;;  %v78_v6 = vld [vmem:[%s3126_s24 + $0x8] sm:$0xff]  ;;  %v79_v7 = vld [vmem:[%s3126_s24 + $0x10] sm:$0xff]  ;;  %2326 = vmatpush3.bf16.msra.mxu1 %v2323_v56 }
  0x1c   :  { %v2307_v8 = vpack.c.bf16 %v78_v6, %v77_v5  ;;  %v80_v9 = vld [vmem:[%s3126_s24 + $0x18] sm:$0xff]  ;;  %v81_v11 = vld [vmem:[%s3126_s24 + $0x20] sm:$0xff]  ;;  %v82_v12 = vld [vmem:[%s3126_s24 + $0x28] sm:$0xff]  ;;  %2328 = vmatprep.subr.bf16.mxu1 %v2327_v58 }
  0x1d   :  { %v2311_v10 = vpack.c.bf16 %v80_v9, %v79_v7  ;;  %v69_v13 = vld [vmem:[%s3127_s21] sm:$0x3]  ;;  %v70_v15 = vld [vmem:[%s3127_s21 + $0x2] sm:$0x3]  ;;  %v71_v16 = vld [vmem:[%s3127_s21 + $0x4] sm:$0x3]  ;;  %v2315_v23 = vpack.c.bf16 %v82_v12, %v81_v11 }
  0x1e   :  { %2308 = vmatprep.subr.bf16.mxu0 %v2307_v8  ;;  %v72_v17 = vld [vmem:[%s3127_s21 + $0x6] sm:$0x3]  ;;  %v100_v18 = vcombine.low %v69_v13, %v70_v15  ;;  %v73_v20 = vld [vmem:[%s3127_s21 + $0x8] sm:$0x3]  ;;  %v74_v21 = vld [vmem:[%s3127_s21 + $0xa] sm:$0x3] }
  0x1f   :  { %2310 = vmatpush3.bf16.msra.mxu0 %v2307_v8  ;;  %v101_v19 = vcombine.low %v71_v16, %v72_v17  ;;  %v75_v22 = vld [vmem:[%s3127_s21 + $0xc] sm:$0x3]  ;;  %v76_v24 = vld [vmem:[%s3127_s21 + $0xe] sm:$0x3]  ;;  %v83_v25 = vld [vmem:[%s3126_s24 + $0x30] sm:$0xff]  ;;  %v117_v29 = vcombine.low %v73_v20, %v74_v21  ;;  %2330 = vmatpush3.bf16.msra.mxu1 %v2327_v58 }
  0x20   :  { %2312 = vmatprep.subr.bf16.mxu0 %v2311_v10  ;;  %v84_v26 = vld [vmem:[%s3126_s24 + $0x38] sm:$0xff]  ;;  %v108_v27 = vrot.slane %v100_v18, %v2626_v14  ;;  %v118_v30 = vcombine.low %v75_v22, %v76_v24  ;;  %2157 = vmatprep.subr.bf16.mxu1 %v2493_v59  ;;  %v2010_v11 = vld [vmem:[%s3107_s3] ss:$0 sm:$0xff] }
  0x21   :  { %v115_v28 = vrot.slane %v101_v19, %v2626_v14  ;;  %v2319_v32 = vpack.c.bf16 %v84_v26, %v83_v25  ;;  %v125_v33 = vrot.slane %v117_v29, %v2626_v14  ;;  %v2011_v13 = vld [vmem:[%s3108_s4] ss:$0 sm:$0xff] }
  0x22   :  { %v132_v34 = vrot.slane %v118_v30, %v2626_v14 }
  0x23   :  { %2314 = vmatpush3.bf16.msra.mxu0 %v2311_v10  ;;  %v116_v31 = vcombine.low %v108_v27, %v115_v28 }
  0x24   :  { %2316 = vmatprep.subr.bf16.mxu0 %v2315_v23  ;;  %v133_v35 = vcombine.low %v125_v33, %v132_v34  ;;  %v225_v33 = vld [vmem:[%s3112_s8] sm:$0x1]  ;;  %s2497_s8 = smov 96  }
  0x25   :  { %2143 = vmatprep.mubr.msk.f32.mxu0 %vm134_vm0, %v116_v31  ;;  %v2495_v31 = vmov 0   ;;  %v220_v34 = vld [vmem:[%s3110_s6] sm:$0x1]  ;;  %s2496_s6 = smov 64  }
  0x27   :  { %2318 = vmatpush3.bf16.msra.mxu0 %v2315_v23 }
  0x28   :  { %2320 = vmatprep.subr.bf16.mxu0 %v2319_v32 }
  0x2b   :  { %2322 = vmatpush3.bf16.msra.mxu0 %v2319_v32  ;;  %v2724_v32 = vand.u32 127, %v105_v2 }
  0x2c   :  { %2165 = vmatprep.subr.bf16.mxu0 %v2493_v59 }
  0x2d   :  { %vm282_vm3 = vcmp.lt.s32.totalorder %v2724_v32, 64 }
  0x2e   :  { %2144 = vmatmul.mubr.msk.f32.vlgmr.msra.gmra.mrb[0].mxu0 %vm134_vm0, %v133_v35  ;;  %v283_v35 = vsel %vm282_vm3, %v225_v33, 0.0 }
  0x2f   :  { %2166 = vmatpush3.bf16.msra.mxu0 %v2686_v62  ;;  %2169 = vmatprep.mubr.msk.bf16.mxu0 %vm2494_vm2, %v2493_v59 }
  0x30   :  { %2167 = vmatprep.subr.bf16.mxu0 %v2493_v59 }
  0x33   :  { %2168 = vmatpush3.bf16.msra.mxu0 %v2696_v1 }
  0x34   :  { %2181 = vmatprep.subr.bf16.mxu0 %v2493_v59 }
 0x101   :  { %v2145_v37 = vpop.f32.mrb[0].mxu0 }
 0x102   :  { %v205_v38 = vpop.f32.mrb[1].mxu0  ;;  %v211_v40 = vadd.f32 %v2145_v37, %v2007_v36  ;;  %v2736_v37 = vsub.s32 0, %v2602_v4 }
 0x103   :  { %v206_v39 = vadd.f32 %v2007_v36, %v205_v38  ;;  %v284_v36 = vadd.f32 %v283_v35, %v220_v34 }
 0x104   :  { %v230_v42 = vsel %vm226_vm1, %v211_v40, 0.0 }
 0x105   :  { %v227_v41 = vsel %vm226_vm1, %v206_v39, 0.0  ;;  %v289_v2 = vrot.slane %v284_v36, %v2736_v37 }
 0x106   :  { %228 = vadd.xlane.f32.xlu0 %v227_v41  ;;  %v2742_v41 = vrot.slane %v225_v33, %v2736_v37 }
 0x10a   :  { %231 = vadd.xlane.f32.xlu0 %v230_v42 }
 0x193   :  { %v229_v43 = vpop.xlane.xlu0 %228 }
 0x194   :  { %v234_v44 = vmul.f32 0.03125, %v229_v43 }
 0x196   :  { %v236_v45 = vsub.f32 %v206_v39, %v234_v44 }
 0x197   :  { %v232_v46 = vpop.xlane.xlu0 %231 }
 0x198   :  { %v235_v47 = vmul.f32 0.03125, %v232_v46  ;;  %v238_v48 = vmul.f32 %v236_v45, %v236_v45 }
 0x19a   :  { %v237_v49 = vsub.f32 %v211_v40, %v235_v47  ;;  %v240_v50 = vsel %vm226_vm1, %v238_v48, 0.0 }
 0x19b   :  { %241 = vadd.xlane.f32.xlu1 %v240_v50 }
 0x19c   :  { %v239_v51 = vmul.f32 %v237_v49, %v237_v49 }
 0x19e   :  { %v243_v52 = vsel %vm226_vm1, %v239_v51, 0.0 }
 0x19f   :  { %244 = vadd.xlane.f32.xlu1 %v243_v52 }
 0x228   :  { %v242_v3 = vpop.xlane.xlu1 %241 }
 0x229   :  { %v246_v5 = vmul.f32 0.03125, %v242_v3 }
 0x22b   :  { %v248_v6 = vadd.f32 1e-05, %v246_v5 }
 0x22c   :  { %v245_v7 = vpop.xlane.xlu1 %244 }
 0x22d   :  { %2355 = vrsqrt.f32 %v248_v6  ;;  %v247_v8 = vmul.f32 0.03125, %v245_v7 }
 0x22f   :  { %v249_v9 = vadd.f32 1e-05, %v247_v8 }
 0x231   :  { %2357 = vrsqrt.f32 %v249_v9 }
 0x237   :  { %v2356_v10 = vpop.eup %2355 }
 0x238   :  { %v252_v12 = vmul.f32 %v2356_v10, %v236_v45 }
 0x23a   :  { %v260_v15 = vmul.f32 %v2010_v11, %v252_v12 }
 0x23b   :  { %v2358_v16 = vpop.eup %2357 }
 0x23c   :  { %v253_v17 = vmul.f32 %v2358_v16, %v237_v49  ;;  %v268_v18 = vadd.f32 %v2011_v13, %v260_v15 }
 0x23e   :  { %v261_v19 = vmul.f32 %v2010_v11, %v253_v17  ;;  %v272_v20 = vmul.f32 0.70710677, %v268_v18  ;;  %v270_v24 = vmul.f32 0.5, %v268_v18 }
 0x240   :  { %v269_v21 = vadd.f32 %v2011_v13, %v261_v19  ;;  %2359 = verf.f32 %v272_v20 }
 0x242   :  { %v273_v22 = vmul.f32 0.70710677, %v269_v21  ;;  %v271_v28 = vmul.f32 0.5, %v269_v21 }
 0x244   :  { %2361 = verf.f32 %v273_v22 }
 0x24a   :  { %v2360_v23 = vpop.eup %2359 }
 0x24b   :  { %v276_v25 = vadd.f32 1.0, %v2360_v23 }
 0x24d   :  { %v278_v26 = vmul.f32 %v276_v25, %v270_v24 }
 0x24e   :  { %v2362_v27 = vpop.eup %2361 }
 0x24f   :  { %2154 = vmatprep.mubr.msk.f32.mxu1 %vm226_vm1, %v278_v26  ;;  %v277_v29 = vadd.f32 1.0, %v2362_v27 }
 0x251   :  { %v279_v30 = vmul.f32 %v277_v29, %v271_v28 }
 0x253   :  { %2155 = vmatmul.mubr.msk.f32.vlgmr.msra.gmra.mrb[0].mxu1 %vm226_vm1, %v279_v30 }
 0x254   :  { %2158 = vmatpush3.bf16.msra.mxu1 %v2686_v62  ;;  %2161 = vmatprep.mubr.msk.bf16.mxu1 %vm2494_vm2, %v2493_v59 }
 0x255   :  { %2159 = vmatprep.subr.bf16.mxu1 %v2493_v59 }
 0x258   :  { %2160 = vmatpush3.bf16.msra.mxu1 %v2696_v1 }
 0x259   :  { %2173 = vmatprep.subr.bf16.mxu1 %v2493_v59 }
 0x25b   :  { %2162 = vmatmul.mubr.bf16.vlgmr.msra.gmra.mrb[4].mxu1 %v2495_v31 }
 0x25c   :  { %2174 = vmatpush3.bf16.msra.mxu1 %v2686_v62  ;;  %2177 = vmatprep.mubr.msk.bf16.mxu1 %vm2494_vm2, %v2493_v59 }
 0x25d   :  { %2175 = vmatprep.subr.bf16.mxu1 %v2493_v59 }
 0x260   :  { %2176 = vmatpush3.bf16.msra.mxu1 %v2696_v1 }
 0x261   :  { %2189 = vmatprep.subr.bf16.mxu1 %v2493_v59 }
 0x326   :  { %v2156_v38 = vpop.f32.mrb[0].mxu1 }
 0x327   :  { %v2739_v39 = vadd.f32 %v2156_v38, %v289_v2  ;;  %v363_v40 = vpop.f32.mrb[1].mxu1 }
 0x328   :  { %v2746_v4 = vadd.f32 %v363_v40, %v289_v2 }
 0x32e   :  { %v411_v42 = vpop.f32.mrb[4].mxu1 }
 0x32f   :  { %v430_v43 = vadd.f32 %v2742_v41, %v411_v42  ;;  %v2163_v44 = vpop.f32.mrb[5].mxu1  ;;  %v417_v47 = vadd.f32 %v411_v42, %v2746_v4 }
 0x330   :  { %v414_v45 = vpop.f32.mrb[6].mxu1 }
 0x331   :  { %432 = vrot.lane.b32.xlu0 %v430_v43, %s2496_s6  ;;  %v2164_v46 = vpop.f32.mrb[7].mxu1  ;;  %v2014_v48 = vmul.f32 -1.442695, %v417_v47 }
 0x333   :  { %2363 = vpow2.f32 %v2014_v48 }
 0x33d   :  { %v2364_v49 = vpop.eup %2363 }
 0x33e   :  { %v421_v50 = vadd.f32 1.0, %v2364_v49 }
 0x340   :  { %2365 = vrcp.f32 %v421_v50 }
 0x34a   :  { %v2366_v51 = vpop.eup %2365 }
 0x34b   :  { %v442_v57 = vsub.f32 1.0, %v2366_v51  ;;  %v448_v60 = vmul.f32 0.0, %v2366_v51 }
 0x3a3   :  { %v433_v52 = vpop.permute.xlu0 %432 }
 0x3a4   :  { %v435_v53 = vmul.f32 %v2366_v51, %v433_v52 }
 0x3a6   :  { %437 = vrot.lane.b32.xlu1 %v435_v53, %s2496_s6 }
 0x418   :  { %v438_v54 = vpop.permute.xlu1 %437 }
 0x419   :  { %v440_v55 = vadd.f32 %v438_v54, %v2746_v4 }
 0x41b   :  { %2367 = vtanh.f32 %v440_v55 }
 0x425   :  { %v2368_v56 = vpop.eup %2367 }
 0x426   :  { %444 = vrot.lane.b32.xlu1 %v2368_v56, %s2497_s8 }
 0x498   :  { %v445_v58 = vpop.permute.xlu1 %444 }
 0x499   :  { %v447_v61 = vmul.f32 %v445_v58, %v442_v57 }
 0x49b   :  { %v2752_v63 = vadd.f32 %v448_v60, %v447_v61 }
 0x49d   :  { %v450_v0 = vpack.c.bf16 %v2752_v63, %v2752_v63  ;;  %v527_v24 = vrot.slane %v2752_v63, 6 }
 0x49f   :  { %452 = vrot.lane.b32.xlu1 %v450_v0, %s2497_s8 }
 0x511   :  { %v453_v3 = vpop.permute.xlu1 %452 }
 0x512   :  { %2170 = vmatmul.mubr.msk.bf16.vlgmr.msra.gmra.mrb[4].mxu0 %vm226_vm1, %v453_v3 }
 0x513   :  { %2182 = vmatpush3.bf16.msra.mxu0 %v2686_v62  ;;  %2185 = vmatprep.mubr.msk.bf16.mxu0 %vm2494_vm2, %v2493_v59 }
 0x514   :  { %2183 = vmatprep.subr.bf16.mxu0 %v2493_v59 }
 0x517   :  { %2184 = vmatpush3.bf16.msra.mxu0 %v2696_v1 }
 0x518   :  { %2197 = vmatprep.subr.bf16.mxu0 %v2493_v59 }
 0x5e5   :  { %v491_v5 = vpop.f32.mrb[4].mxu0 }
 0x5e6   :  { %v507_v6 = vadd.f32 %v491_v5, %v2742_v41  ;;  %v2171_v7 = vpop.f32.mrb[5].mxu0  ;;  %v498_v11 = vrot.slane %v491_v5, 6 }
 0x5e7   :  { %v494_v8 = vpop.f32.mrb[6].mxu0 }
 0x5e8   :  { %v509_v9 = vrot.slane %v507_v6, 6  ;;  %v2172_v10 = vpop.f32.mrb[7].mxu0  ;;  %v500_v12 = vadd.f32 %v498_v11, %v2746_v4 }
 0x5ea   :  { %510 = vrot.lane.b32.xlu0 %v509_v9, %s2496_s6  ;;  %v2016_v13 = vmul.f32 -1.442695, %v500_v12 }
 0x5ec   :  { %2369 = vpow2.f32 %v2016_v13 }
 0x5f6   :  { %v2370_v15 = vpop.eup %2369 }
 0x5f7   :  { %v504_v16 = vadd.f32 1.0, %v2370_v15 }
 0x5f9   :  { %2371 = vrcp.f32 %v504_v16 }
 0x603   :  { %v2372_v17 = vpop.eup %2371 }
 0x604   :  { %v520_v23 = vsub.f32 1.0, %v2372_v17  ;;  %v529_v26 = vmul.f32 %v2372_v17, %v527_v24 }
 0x65c   :  { %v511_v18 = vpop.permute.xlu0 %510 }
 0x65d   :  { %v513_v19 = vmul.f32 %v2372_v17, %v511_v18 }
 0x65f   :  { %515 = vrot.lane.b32.xlu1 %v513_v19, %s2496_s6 }
 0x6d1   :  { %v516_v20 = vpop.permute.xlu1 %515 }
 0x6d2   :  { %v518_v21 = vadd.f32 %v516_v20, %v2746_v4 }
 0x6d4   :  { %2373 = vtanh.f32 %v518_v21 }
 0x6de   :  { %v2374_v22 = vpop.eup %2373 }
 0x6df   :  { %522 = vrot.lane.b32.xlu0 %v2374_v22, %s2497_s8 }
 0x751   :  { %v523_v25 = vpop.permute.xlu0 %522 }
 0x752   :  { %v525_v27 = vmul.f32 %v523_v25, %v520_v23 }
 0x754   :  { %v530_v28 = vadd.f32 %v529_v26, %v525_v27 }
 0x756   :  { %v531_v29 = vpack.c.bf16 %v530_v28, %v530_v28  ;;  %v609_v54 = vrot.slane %v530_v28, 6  ;;  %v1019_v60 = vsel %vm1018_vm4, %v2752_v63, %v530_v28 }
 0x758   :  { %v533_v30 = vrot.slane %v531_v29, 1 }
 0x75a   :  { %534 = vrot.lane.b32.xlu1 %v533_v30, %s2497_s8 }
 0x7cc   :  { %v535_v33 = vpop.permute.xlu1 %534 }
 0x7cd   :  { %2178 = vmatmul.mubr.msk.bf16.vlgmr.msra.gmra.mrb[8].mxu1 %vm226_vm1, %v535_v33 }
 0x7ce   :  { %2190 = vmatpush3.bf16.msra.mxu1 %v2686_v62  ;;  %2193 = vmatprep.mubr.msk.bf16.mxu1 %vm2494_vm2, %v2493_v59 }
 0x7cf   :  { %2191 = vmatprep.subr.bf16.mxu1 %v2493_v59 }
 0x7d2   :  { %2192 = vmatpush3.bf16.msra.mxu1 %v2696_v1 }
 0x7d3   :  { %2205 = vmatprep.subr.bf16.mxu1 %v2493_v59 }
 0x8a0   :  { %v573_v34 = vpop.f32.mrb[8].mxu1 }
 0x8a1   :  { %v589_v35 = vadd.f32 %v573_v34, %v2742_v41  ;;  %v2179_v36 = vpop.f32.mrb[9].mxu1  ;;  %v580_v42 = vrot.slane %v573_v34, 4 }
 0x8a2   :  { %v576_v2 = vpop.f32.mrb[10].mxu1 }
 0x8a3   :  { %v591_v38 = vrot.slane %v589_v35, 4  ;;  %v2180_v40 = vpop.f32.mrb[11].mxu1  ;;  %v582_v43 = vadd.f32 %v580_v42, %v2746_v4 }
 0x8a5   :  { %592 = vrot.lane.b32.xlu0 %v591_v38, %s2496_s6  ;;  %v2018_v44 = vmul.f32 -1.442695, %v582_v43 }
 0x8a7   :  { %2375 = vpow2.f32 %v2018_v44 }
 0x8b1   :  { %v2376_v45 = vpop.eup %2375 }
 0x8b2   :  { %v586_v46 = vadd.f32 1.0, %v2376_v45 }
 0x8b4   :  { %2377 = vrcp.f32 %v586_v46 }
 0x8be   :  { %v2378_v47 = vpop.eup %2377 }
 0x8bf   :  { %v602_v53 = vsub.f32 1.0, %v2378_v47  ;;  %v611_v56 = vmul.f32 %v2378_v47, %v609_v54 }
 0x917   :  { %v593_v48 = vpop.permute.xlu0 %592 }
 0x918   :  { %v595_v49 = vmul.f32 %v2378_v47, %v593_v48 }
 0x91a   :  { %597 = vrot.lane.b32.xlu1 %v595_v49, %s2496_s6 }
 0x98c   :  { %v598_v50 = vpop.permute.xlu1 %597 }
 0x98d   :  { %v600_v51 = vadd.f32 %v598_v50, %v2746_v4 }
 0x98f   :  { %2379 = vtanh.f32 %v600_v51 }
 0x999   :  { %v2380_v52 = vpop.eup %2379 }
 0x99a   :  { %604 = vrot.lane.b32.xlu0 %v2380_v52, %s2497_s8 }
 0xa0c   :  { %v605_v55 = vpop.permute.xlu0 %604 }
 0xa0d   :  { %v607_v57 = vmul.f32 %v605_v55, %v602_v53 }
 0xa0f   :  { %v612_v58 = vadd.f32 %v611_v56, %v607_v57 }
 0xa11   :  { %v613_v61 = vpack.c.bf16 %v612_v58, %v612_v58  ;;  %v1021_v0 = vsel %vm1020_vm5, %v1019_v60, %v612_v58  ;;  %v691_v24 = vrot.slane %v612_v58, 6 }
 0xa13   :  { %v615_v3 = vrot.slane %v613_v61, 2 }
 0xa15   :  { %616 = vrot.lane.b32.xlu1 %v615_v3, %s2497_s8 }
 0xa87   :  { %v617_v5 = vpop.permute.xlu1 %616 }
 0xa88   :  { %2186 = vmatmul.mubr.msk.bf16.vlgmr.msra.gmra.mrb[8].mxu0 %vm226_vm1, %v617_v5 }
 0xa89   :  { %2198 = vmatpush3.bf16.msra.mxu0 %v2686_v62  ;;  %2201 = vmatprep.mubr.msk.bf16.mxu0 %vm2494_vm2, %v2493_v59 }
 0xa8a   :  { %2199 = vmatprep.subr.bf16.mxu0 %v2493_v59 }
 0xa8d   :  { %2200 = vmatpush3.bf16.msra.mxu0 %v2696_v1 }
 0xa8e   :  { %2213 = vmatprep.subr.bf16.mxu0 %v2493_v59 }
 0xb5b   :  { %v655_v63 = vpop.f32.mrb[8].mxu0 }
 0xb5c   :  { %v671_v6 = vadd.f32 %v655_v63, %v2742_v41  ;;  %v2187_v7 = vpop.f32.mrb[9].mxu0  ;;  %v662_v11 = vrot.slane %v655_v63, 2 }
 0xb5d   :  { %v658_v8 = vpop.f32.mrb[10].mxu0 }
 0xb5e   :  { %v673_v9 = vrot.slane %v671_v6, 2  ;;  %v2188_v10 = vpop.f32.mrb[11].mxu0  ;;  %v664_v12 = vadd.f32 %v662_v11, %v2746_v4 }
 0xb60   :  { %674 = vrot.lane.b32.xlu0 %v673_v9, %s2496_s6  ;;  %v2020_v13 = vmul.f32 -1.442695, %v664_v12 }
 0xb62   :  { %2381 = vpow2.f32 %v2020_v13 }
 0xb6c   :  { %v2382_v15 = vpop.eup %2381 }
 0xb6d   :  { %v668_v16 = vadd.f32 1.0, %v2382_v15 }
 0xb6f   :  { %2383 = vrcp.f32 %v668_v16 }
 0xb79   :  { %v2384_v17 = vpop.eup %2383 }
 0xb7a   :  { %v684_v23 = vsub.f32 1.0, %v2384_v17  ;;  %v693_v26 = vmul.f32 %v2384_v17, %v691_v24 }
 0xbd2   :  { %v675_v18 = vpop.permute.xlu0 %674 }
 0xbd3   :  { %v677_v19 = vmul.f32 %v2384_v17, %v675_v18 }
 0xbd5   :  { %679 = vrot.lane.b32.xlu1 %v677_v19, %s2496_s6 }
 0xc47   :  { %v680_v20 = vpop.permute.xlu1 %679 }
 0xc48   :  { %v682_v21 = vadd.f32 %v680_v20, %v2746_v4 }
 0xc4a   :  { %2385 = vtanh.f32 %v682_v21 }
 0xc54   :  { %v2386_v22 = vpop.eup %2385 }
 0xc55   :  { %686 = vrot.lane.b32.xlu0 %v2386_v22, %s2497_s8 }
 0xcc7   :  { %v687_v25 = vpop.permute.xlu0 %686 }
 0xcc8   :  { %v689_v27 = vmul.f32 %v687_v25, %v684_v23 }
 0xcca   :  { %v694_v28 = vadd.f32 %v693_v26, %v689_v27 }
 0xccc   :  { %v695_v29 = vpack.c.bf16 %v694_v28, %v694_v28  ;;  %v2803_v30 = vsel %vm1022_vm6, %v1021_v0, %v694_v28  ;;  %v769_v52 = vrot.slane %v694_v28, 6 }
 0xcce   :  { %v697_v33 = vrot.slane %v695_v29, 3 }
 0xcd0   :  { %698 = vrot.lane.b32.xlu1 %v697_v33, %s2497_s8 }
 0xd42   :  { %v699_v34 = vpop.permute.xlu1 %698 }
 0xd43   :  { %2194 = vmatmul.mubr.msk.bf16.vlgmr.msra.gmra.mrb[12].mxu1 %vm226_vm1, %v699_v34 }
 0xd44   :  { %2206 = vmatpush3.bf16.msra.mxu1 %v2686_v62  ;;  %2209 = vmatprep.mubr.msk.bf16.mxu1 %vm2494_vm2, %v2493_v59 }
 0xd45   :  { %2207 = vmatprep.subr.bf16.mxu1 %v2493_v59 }
 0xd48   :  { %2208 = vmatpush3.bf16.msra.mxu1 %v2696_v1 }
 0xe16   :  { %v737_v4 = vpop.f32.mrb[12].mxu1 }
 0xe17   :  { %v750_v35 = vadd.f32 %v737_v4, %v2742_v41  ;;  %v2195_v36 = vpop.f32.mrb[13].mxu1  ;;  %v743_v40 = vadd.f32 %v737_v4, %v2739_v39 }
 0xe18   :  { %v740_v2 = vpop.f32.mrb[14].mxu1 }
 0xe19   :  { %752 = vrot.lane.b32.xlu0 %v750_v35, %s2496_s6  ;;  %v2196_v38 = vpop.f32.mrb[15].mxu1  ;;  %v2022_v42 = vmul.f32 -1.442695, %v743_v40 }
 0xe1b   :  { %2387 = vpow2.f32 %v2022_v42 }
 0xe25   :  { %v2388_v43 = vpop.eup %2387 }
 0xe26   :  { %v747_v44 = vadd.f32 1.0, %v2388_v43 }
 0xe28   :  { %2389 = vrcp.f32 %v747_v44 }
 0xe32   :  { %v2390_v45 = vpop.eup %2389 }
 0xe33   :  { %v762_v51 = vsub.f32 1.0, %v2390_v45  ;;  %v771_v54 = vmul.f32 %v2390_v45, %v769_v52 }
 0xe8b   :  { %v753_v46 = vpop.permute.xlu0 %752 }
 0xe8c   :  { %v755_v47 = vmul.f32 %v2390_v45, %v753_v46 }
 0xe8e   :  { %757 = vrot.lane.b32.xlu1 %v755_v47, %s2496_s6 }
 0xf00   :  { %v758_v48 = vpop.permute.xlu1 %757 }
 0xf01   :  { %v760_v49 = vadd.f32 %v758_v48, %v2739_v39 }
 0xf03   :  { %2391 = vtanh.f32 %v760_v49 }
 0xf0d   :  { %v2392_v50 = vpop.eup %2391 }
 0xf0e   :  { %764 = vrot.lane.b32.xlu0 %v2392_v50, %s2497_s8 }
 0xf80   :  { %v765_v53 = vpop.permute.xlu0 %764 }
 0xf81   :  { %v767_v55 = vmul.f32 %v765_v53, %v762_v51 }
 0xf83   :  { %v2818_v56 = vadd.f32 %v771_v54, %v767_v55 }
 0xf85   :  { %v773_v57 = vpack.c.bf16 %v2818_v56, %v2818_v56  ;;  %v850_v17 = vrot.slane %v2818_v56, 6 }
 0xf87   :  { %775 = vrot.lane.b32.xlu1 %v773_v57, %s2497_s8 }
 0xff9   :  { %v776_v58 = vpop.permute.xlu1 %775 }
 0xffa   :  { %2202 = vmatmul.mubr.msk.bf16.vlgmr.msra.gmra.mrb[12].mxu0 %vm226_vm1, %v776_v58 }
 0xffb   :  { %2214 = vmatpush3.bf16.msra.mxu0 %v2686_v62  ;;  %2217 = vmatprep.mubr.msk.bf16.mxu0 %vm2494_vm2, %v2493_v59 }
 0xffc   :  { %2215 = vmatprep.subr.bf16.mxu0 %v2493_v59 }
 0xfff   :  { %2216 = vmatpush3.bf16.msra.mxu0 %v2696_v1 }
0x1000   :  { %2232 = vmatprep.subr.bf16.mxu0 %v2493_v59 }
0x10cd   :  { %v814_v60 = vpop.f32.mrb[12].mxu0 }
0x10ce   :  { %v830_v61 = vadd.f32 %v814_v60, %v2742_v41  ;;  %v2203_v0 = vpop.f32.mrb[13].mxu0  ;;  %v821_v6 = vrot.slane %v814_v60, 6 }
0x10cf   :  { %v817_v3 = vpop.f32.mrb[14].mxu0 }
0x10d0   :  { %v832_v5 = vrot.slane %v830_v61, 6  ;;  %v2204_v63 = vpop.f32.mrb[15].mxu0  ;;  %v823_v62 = vadd.f32 %v821_v6, %v2739_v39 }
0x10d2   :  { %833 = vrot.lane.b32.xlu0 %v832_v5, %s2496_s6  ;;  %v2024_v7 = vmul.f32 -1.442695, %v823_v62 }
0x10d4   :  { %2393 = vpow2.f32 %v2024_v7 }
0x10de   :  { %v2394_v8 = vpop.eup %2393 }
0x10df   :  { %v827_v9 = vadd.f32 1.0, %v2394_v8 }
0x10e1   :  { %2395 = vrcp.f32 %v827_v9 }
0x10eb   :  { %v2396_v1 = vpop.eup %2395 }
0x10ec   :  { %v843_v16 = vsub.f32 1.0, %v2396_v1  ;;  %v852_v19 = vmul.f32 %v2396_v1, %v850_v17 }
0x1144   :  { %v834_v10 = vpop.permute.xlu0 %833 }
0x1145   :  { %v836_v11 = vmul.f32 %v2396_v1, %v834_v10 }
0x1147   :  { %838 = vrot.lane.b32.xlu1 %v836_v11, %s2496_s6 }
0x11b9   :  { %v839_v12 = vpop.permute.xlu1 %838 }
0x11ba   :  { %v841_v13 = vadd.f32 %v839_v12, %v2739_v39 }
0x11bc   :  { %2397 = vtanh.f32 %v841_v13 }
0x11c6   :  { %v2398_v15 = vpop.eup %2397 }
0x11c7   :  { %845 = vrot.lane.b32.xlu0 %v2398_v15, %s2497_s8 }
0x1239   :  { %v846_v18 = vpop.permute.xlu0 %845 }
0x123a   :  { %v848_v20 = vmul.f32 %v846_v18, %v843_v16 }
0x123c   :  { %v853_v21 = vadd.f32 %v852_v19, %v848_v20 }
0x123e   :  { %v854_v22 = vpack.c.bf16 %v853_v21, %v853_v21  ;;  %v932_v47 = vrot.slane %v853_v21, 6  ;;  %v1024_v52 = vsel %vm1018_vm4, %v2818_v56, %v853_v21 }
0x1240   :  { %v856_v23 = vrot.slane %v854_v22, 1 }
0x1242   :  { %857 = vrot.lane.b32.xlu1 %v856_v23, %s2497_s8 }
0x12b4   :  { %v858_v24 = vpop.permute.xlu1 %857 }
0x12b5   :  { %2210 = vmatmul.mubr.msk.bf16.vlgmr.msra.gmra.mrb[16].mxu1 %vm226_vm1, %v858_v24 }
0x1388   :  { %v896_v25 = vpop.f32.mrb[16].mxu1 }
0x1389   :  { %v912_v26 = vadd.f32 %v896_v25, %v2742_v41  ;;  %v2211_v27 = vpop.f32.mrb[17].mxu1  ;;  %v903_v34 = vrot.slane %v896_v25, 4 }
0x138a   :  { %v899_v28 = vpop.f32.mrb[18].mxu1 }
0x138b   :  { %v914_v29 = vrot.slane %v912_v26, 4  ;;  %v2212_v33 = vpop.f32.mrb[19].mxu1  ;;  %v905_v4 = vadd.f32 %v903_v34, %v2739_v39 }
0x138d   :  { %915 = vrot.lane.b32.xlu0 %v914_v29, %s2496_s6  ;;  %v2026_v35 = vmul.f32 -1.442695, %v905_v4 }
0x138f   :  { %2399 = vpow2.f32 %v2026_v35  ;;  %v2030_v35 = vld [vmem:[%s3114_s10] ss:$0 sm:$0xff] }
0x1399   :  { %v2400_v36 = vpop.eup %2399 }
0x139a   :  { %v909_v2 = vadd.f32 1.0, %v2400_v36 }
0x139c   :  { %2401 = vrcp.f32 %v909_v2  ;;  %v2029_v2 = vld [vmem:[%s3113_s9] ss:$0 sm:$0xff] }
0x13a6   :  { %v2402_v38 = vpop.eup %2401 }
0x13a7   :  { %v925_v46 = vsub.f32 1.0, %v2402_v38  ;;  %v934_v49 = vmul.f32 %v2402_v38, %v932_v47 }
0x13ff   :  { %v916_v40 = vpop.permute.xlu0 %915 }
0x1400   :  { %v918_v42 = vmul.f32 %v2402_v38, %v916_v40  ;;  %v1034_v38 = vld [vmem:[%s3117_s13] sm:$0xff]  ;;  %v1035_v40 = vld [vmem:[%s3117_s13 + $0x8] sm:$0xff] }
0x1402   :  { %920 = vrot.lane.b32.xlu1 %v918_v42, %s2496_s6  ;;  %v1036_v42 = vld [vmem:[%s3117_s13 + $0x10] sm:$0xff] }
0x1474   :  { %v921_v43 = vpop.permute.xlu1 %920 }
0x1475   :  { %v923_v44 = vadd.f32 %v921_v43, %v2739_v39  ;;  %v2884_v43 = vpack.c.bf16 %v1035_v40, %v1034_v38 }
0x1477   :  { %2403 = vtanh.f32 %v923_v44  ;;  %v1037_v44 = vld [vmem:[%s3117_s13 + $0x18] sm:$0xff] }
0x1481   :  { %v2404_v45 = vpop.eup %2403 }
0x1482   :  { %927 = vrot.lane.b32.xlu0 %v2404_v45, %s2497_s8  ;;  %v2890_v45 = vpack.c.bf16 %v1037_v44, %v1036_v42 }
0x14f4   :  { %v928_v48 = vpop.permute.xlu0 %927 }
0x14f5   :  { %v930_v50 = vmul.f32 %v928_v48, %v925_v46 }
0x14f7   :  { %v935_v51 = vadd.f32 %v934_v49, %v930_v50 }
0x14f9   :  { %v936_v53 = vpack.c.bf16 %v935_v51, %v935_v51  ;;  %v1025_v54 = vsel %vm1020_vm5, %v1024_v52, %v935_v51  ;;  %v1014_v16 = vrot.slane %v935_v51, 6 }
0x14fb   :  { %v938_v55 = vrot.slane %v936_v53, 2 }
0x14fd   :  { %939 = vrot.lane.b32.xlu1 %v938_v55, %s2497_s8 }
0x156f   :  { %v940_v57 = vpop.permute.xlu1 %939 }
0x1570   :  { %2218 = vmatmul.mubr.msk.bf16.vlgmr.msra.gmra.mrb[16].mxu0 %vm226_vm1, %v940_v57 }
0x1571   :  { %2236 = vmatprep.mubr.msk.bf16.mxu0 %vm2494_vm2, %v2493_v59  ;;  %2233 = vmatpush3.bf16.msra.mxu0 %v2884_v43 }
0x1572   :  { %2234 = vmatprep.subr.bf16.mxu0 %v2493_v59 }
0x1575   :  { %2235 = vmatpush3.bf16.msra.mxu0 %v2890_v45 }
0x1576   :  { %2248 = vmatprep.subr.bf16.mxu0 %v2493_v59 }
0x1578   :  { %2237 = vmatmul.mubr.bf16.vlgmr.msra.gmra.mrb[20].mxu0 %v2495_v31 }
0x1579   :  { %2249 = vmatpush3.bf16.msra.mxu0 %v2884_v43  ;;  %2252 = vmatprep.mubr.msk.bf16.mxu0 %vm2494_vm2, %v2493_v59 }
0x157a   :  { %2250 = vmatprep.subr.bf16.mxu0 %v2493_v59 }
0x157d   :  { %2251 = vmatpush3.bf16.msra.mxu0 %v2890_v45 }
0x157e   :  { %2264 = vmatprep.subr.bf16.mxu0 %v2493_v59 }
0x1643   :  { %v978_v58 = vpop.f32.mrb[16].mxu0 }
0x1644   :  { %v994_v60 = vadd.f32 %v978_v58, %v2742_v41  ;;  %v2219_v61 = vpop.f32.mrb[17].mxu0  ;;  %v985_v56 = vrot.slane %v978_v58, 2 }
0x1645   :  { %v981_v0 = vpop.f32.mrb[18].mxu0  ;;  %v1030_v61 = vld [vmem:[%s3115_s11 + $0x8] sm:$0xff] }
0x1646   :  { %v996_v3 = vrot.slane %v994_v60, 2  ;;  %v2220_v5 = vpop.f32.mrb[19].mxu0  ;;  %v987_v63 = vadd.f32 %v985_v56, %v2739_v39  ;;  %v1029_v60 = vld [vmem:[%s3115_s11] sm:$0xff]  ;;  %v1031_v0 = vld [vmem:[%s3115_s11 + $0x10] sm:$0xff] }
0x1647   :  { %v1032_v5 = vld [vmem:[%s3115_s11 + $0x18] sm:$0xff] }
0x1648   :  { %997 = vrot.lane.b32.xlu0 %v996_v3, %s2496_s6  ;;  %v2028_v6 = vmul.f32 -1.442695, %v987_v63  ;;  %v2331_v3 = vpack.c.bf16 %v1030_v61, %v1029_v60  ;;  %v2335_v63 = vpack.c.bf16 %v1032_v5, %v1031_v0 }
0x164a   :  { %2405 = vpow2.f32 %v2028_v6  ;;  %2332 = vmatprep.subr.bf16.mxu1 %v2331_v3 }
0x164b   :  { %2334 = vmatpush3.bf16.msra.mxu1 %v2331_v3 }
0x164c   :  { %2336 = vmatprep.subr.bf16.mxu1 %v2335_v63 }
0x164f   :  { %2338 = vmatpush3.bf16.msra.mxu1 %v2335_v63 }
0x1650   :  { %2240 = vmatprep.subr.bf16.mxu1 %v2493_v59 }
0x1654   :  { %v2406_v62 = vpop.eup %2405 }
0x1655   :  { %v991_v7 = vadd.f32 1.0, %v2406_v62 }
0x1657   :  { %2407 = vrcp.f32 %v991_v7 }
0x1661   :  { %v2408_v8 = vpop.eup %2407 }
0x1662   :  { %v1007_v15 = vsub.f32 1.0, %v2408_v8  ;;  %v1016_v18 = vmul.f32 %v2408_v8, %v1014_v16  ;;  %v1038_v16 = vld [vmem:[%s3118_s14] sm:$0x1] }
0x16ba   :  { %v998_v9 = vpop.permute.xlu0 %997 }
0x16bb   :  { %v1000_v1 = vmul.f32 %v2408_v8, %v998_v9 }
0x16bd   :  { %1002 = vrot.lane.b32.xlu1 %v1000_v1, %s2496_s6 }
0x16c1   :  { %1041 = vrot.lane.b32.xlu1 %v2803_v30, %s2497_s8 }
0x172f   :  { %v1003_v41 = vpop.permute.xlu1 %1002 }
0x1730   :  { %v1005_v10 = vadd.f32 %v1003_v41, %v2739_v39 }
0x1732   :  { %2409 = vtanh.f32 %v1005_v10 }
0x1733   :  { %v1042_v11 = vpop.permute.xlu1 %1041 }
0x1734   :  { %v1047_v12 = vsel %vm226_vm1, %v1042_v11, 0.0 }
0x1735   :  { %1048 = vadd.xlane.f32.xlu1 %v1047_v12 }
0x173c   :  { %v2410_v13 = vpop.eup %2409 }
0x173d   :  { %1009 = vrot.lane.b32.xlu0 %v2410_v13, %s2497_s8 }
0x17af   :  { %v1010_v17 = vpop.permute.xlu0 %1009 }
0x17b0   :  { %v1012_v19 = vmul.f32 %v1010_v17, %v1007_v15  ;;  %v2921_v17 = vrot.slane %v1038_v16, %v2736_v37 }
0x17b2   :  { %v1017_v20 = vadd.f32 %v1016_v18, %v1012_v19  ;;  %v1240_v18 = vpop.f32.mrb[20].mxu0 }
0x17b3   :  { %v1259_v19 = vadd.f32 %v2921_v17, %v1240_v18 }
0x17b4   :  { %v1026_v21 = vsel %vm1022_vm6, %v1025_v54, %v1017_v20  ;;  %v2238_v20 = vpop.f32.mrb[21].mxu0 }
0x17b5   :  { %1043 = vrot.lane.b32.xlu0 %v1026_v21, %s2497_s8 }
0x17c2   :  { %v1049_v23 = vpop.xlane.xlu1 %1048 }
0x17c3   :  { %v1053_v24 = vmul.f32 0.03125, %v1049_v23 }
0x17c5   :  { %v1055_v25 = vsub.f32 %v2803_v30, %v1053_v24  ;;  %v1033_v24 = vld [vmem:[%s3116_s12] sm:$0x1] }
0x17c7   :  { %v1057_v26 = vmul.f32 %v1055_v25, %v1055_v25 }
0x1827   :  { %v1044_v22 = vpop.permute.xlu0 %1043 }
0x1828   :  { %v1050_v39 = vsel %vm226_vm1, %v1044_v22, 0.0 }
0x1829   :  { %1051 = vadd.xlane.f32.xlu0 %v1050_v39 }
0x183f   :  { %1061 = vrot.lane.b32.xlu0 %v1057_v26, %s2497_s8 }
0x18b6   :  { %v1052_v27 = vpop.xlane.xlu0 %1051 }
0x18b7   :  { %v1054_v28 = vmul.f32 0.03125, %v1052_v27 }
0x18b9   :  { %v1056_v29 = vsub.f32 %v1026_v21, %v1054_v28  ;;  %v1243_v21 = vpop.f32.mrb[22].mxu0 }
0x18ba   :  { %v1062_v34 = vpop.permute.xlu0 %1061  ;;  %v2239_v22 = vpop.f32.mrb[23].mxu0 }
0x18bb   :  { %v1058_v33 = vmul.f32 %v1056_v29, %v1056_v29  ;;  %v1067_v4 = vsel %vm226_vm1, %v1062_v34, 0.0 }
0x18bd   :  { %1063 = vrot.lane.b32.xlu1 %v1058_v33, %s2497_s8 }
0x18e1   :  { %1068 = vadd.xlane.f32.xlu1 %v1067_v4 }
0x18f2   :  { %1096 = vrot.lane.b32.xlu1 %v2030_v35, %s2498_s0 }
0x192f   :  { %v1064_v30 = vpop.permute.xlu1 %1063 }
0x1930   :  { %v1070_v36 = vsel %vm226_vm1, %v1064_v30, 0.0 }
0x1931   :  { %1071 = vadd.xlane.f32.xlu0 %v1070_v36 }
0x1947   :  { %1086 = vrot.lane.b32.xlu0 %v2029_v2, %s2498_s0 }
0x196e   :  { %v1069_v46 = vpop.xlane.xlu1 %1068 }
0x196f   :  { %v1073_v47 = vmul.f32 0.03125, %v1069_v46 }
0x1971   :  { %v1075_v48 = vadd.f32 1e-05, %v1073_v47 }
0x1972   :  { %v1097_v54 = vpop.permute.xlu1 %1096 }
0x1973   :  { %2411 = vrsqrt.f32 %v1075_v48 }
0x197d   :  { %v2412_v49 = vpop.eup %2411 }
0x197e   :  { %v1079_v31 = vmul.f32 %v2412_v49, %v1055_v25  ;;  %v1111_v25 = vsel %vm282_vm3, %v1038_v16, 0.0 }
0x197f   :  { %v1112_v26 = vadd.f32 %v1111_v25, %v1033_v24 }
0x1981   :  { %v1117_v27 = vrot.slane %v1112_v26, %v2736_v37 }
0x19be   :  { %v1072_v50 = vpop.xlane.xlu0 %1071 }
0x19bf   :  { %v1074_v51 = vmul.f32 0.03125, %v1072_v50 }
0x19c1   :  { %v1076_v52 = vadd.f32 1e-05, %v1074_v51 }
0x19c2   :  { %v1087_v53 = vpop.permute.xlu0 %1086 }
0x19c3   :  { %2413 = vrsqrt.f32 %v1076_v52  ;;  %v1089_v55 = vmul.f32 %v1087_v53, %v1079_v31 }
0x19c5   :  { %v1099_v57 = vadd.f32 %v1097_v54, %v1089_v55 }
0x19c7   :  { %v1103_v58 = vmul.f32 0.70710677, %v1099_v57  ;;  %v1101_v9 = vmul.f32 0.5, %v1099_v57 }
0x19c9   :  { %2415 = verf.f32 %v1103_v58 }
0x19cd   :  { %v2414_v56 = vpop.eup %2413 }
0x19ce   :  { %v1080_v6 = vmul.f32 %v2414_v56, %v1056_v29 }
0x19d0   :  { %v1090_v62 = vmul.f32 %v1087_v53, %v1080_v6 }
0x19d2   :  { %v1100_v7 = vadd.f32 %v1097_v54, %v1090_v62 }
0x19d3   :  { %v2416_v8 = vpop.eup %2415 }
0x19d4   :  { %v1104_v1 = vmul.f32 0.70710677, %v1100_v7  ;;  %v1107_v41 = vadd.f32 1.0, %v2416_v8  ;;  %v1102_v12 = vmul.f32 0.5, %v1100_v7 }
0x19d6   :  { %2417 = verf.f32 %v1104_v1  ;;  %v1109_v10 = vmul.f32 %v1107_v41, %v1101_v9 }
0x19d8   :  { %1121 = vrot.lane.b32.xlu1 %v1109_v10, %s2497_s8 }
0x19dc   :  { %1261 = vrot.lane.b32.xlu1 %v1259_v19, %s2496_s6 }
0x19e0   :  { %v2418_v11 = vpop.eup %2417 }
0x19e1   :  { %v1108_v13 = vadd.f32 1.0, %v2418_v11 }
0x19e3   :  { %v1110_v15 = vmul.f32 %v1108_v13, %v1102_v12 }
0x19e5   :  { %1123 = vrot.lane.b32.xlu0 %v1110_v15, %s2497_s8 }
0x1a4a   :  { %v1122_v39 = vpop.permute.xlu1 %1121 }
0x1a4b   :  { %2229 = vmatprep.mubr.msk.f32.mxu1 %vm226_vm1, %v1122_v39 }
0x1a4e   :  { %v1262_v2 = vpop.permute.xlu1 %1261 }
0x1a57   :  { %v1124_v23 = vpop.permute.xlu0 %1123 }
0x1a58   :  { %2230 = vmatmul.mubr.msk.f32.vlgmr.msra.gmra.mrb[2].mxu1 %vm226_vm1, %v1124_v23 }
0x1a59   :  { %2241 = vmatpush3.bf16.msra.mxu1 %v2884_v43  ;;  %2244 = vmatprep.mubr.msk.bf16.mxu1 %vm2494_vm2, %v2493_v59 }
0x1a5a   :  { %2242 = vmatprep.subr.bf16.mxu1 %v2493_v59 }
0x1a5d   :  { %2243 = vmatpush3.bf16.msra.mxu1 %v2890_v45 }
0x1a5e   :  { %2256 = vmatprep.subr.bf16.mxu1 %v2493_v59 }
0x1b2b   :  { %v2231_v28 = vpop.f32.mrb[2].mxu1 }
0x1b2c   :  { %v2939_v29 = vadd.f32 %v2231_v28, %v1117_v27  ;;  %v1195_v33 = vpop.f32.mrb[3].mxu1 }
0x1b2d   :  { %v2941_v34 = vadd.f32 %v1195_v33, %v1117_v27 }
0x1b2f   :  { %v1246_v4 = vadd.f32 %v1240_v18, %v2941_v34 }
0x1b31   :  { %v2033_v35 = vmul.f32 -1.442695, %v1246_v4 }
0x1b33   :  { %2419 = vpow2.f32 %v2033_v35 }
0x1b3d   :  { %v2420_v30 = vpop.eup %2419 }
0x1b3e   :  { %v1250_v36 = vadd.f32 1.0, %v2420_v30 }
0x1b40   :  { %2421 = vrcp.f32 %v1250_v36 }
0x1b4a   :  { %v2422_v38 = vpop.eup %2421 }
0x1b4b   :  { %v1264_v32 = vmul.f32 %v2422_v38, %v1262_v2  ;;  %v1271_v44 = vsub.f32 1.0, %v2422_v38  ;;  %v1277_v47 = vmul.f32 0.0, %v2422_v38 }
0x1b4d   :  { %1266 = vrot.lane.b32.xlu0 %v1264_v32, %s2496_s6 }
0x1bbf   :  { %v1267_v40 = vpop.permute.xlu0 %1266 }
0x1bc0   :  { %v1269_v37 = vadd.f32 %v1267_v40, %v2941_v34 }
0x1bc2   :  { %2423 = vtanh.f32 %v1269_v37 }
0x1bcc   :  { %v2424_v42 = vpop.eup %2423 }
0x1bcd   :  { %1273 = vrot.lane.b32.xlu1 %v2424_v42, %s2497_s8 }
0x1c3f   :  { %v1274_v46 = vpop.permute.xlu1 %1273 }
0x1c40   :  { %v1276_v48 = vmul.f32 %v1274_v46, %v1271_v44 }
0x1c42   :  { %v2947_v49 = vadd.f32 %v1277_v47, %v1276_v48 }
0x1c44   :  { %v1279_v50 = vpack.c.bf16 %v2947_v49, %v2947_v49  ;;  %v1356_v9 = vrot.slane %v2947_v49, 6 }
0x1c46   :  { %1281 = vrot.lane.b32.xlu0 %v1279_v50, %s2497_s8 }
0x1cb8   :  { %v1282_v51 = vpop.permute.xlu0 %1281 }
0x1cb9   :  { %2245 = vmatmul.mubr.msk.bf16.vlgmr.msra.gmra.mrb[20].mxu1 %vm226_vm1, %v1282_v51 }
0x1cba   :  { %2257 = vmatpush3.bf16.msra.mxu1 %v2884_v43  ;;  %2260 = vmatprep.mubr.msk.bf16.mxu1 %vm2494_vm2, %v2493_v59 }
0x1cbb   :  { %2258 = vmatprep.subr.bf16.mxu1 %v2493_v59 }
0x1cbe   :  { %2259 = vmatpush3.bf16.msra.mxu1 %v2890_v45 }
0x1cbf   :  { %2272 = vmatprep.subr.bf16.mxu1 %v2493_v59 }
0x1d8c   :  { %v1320_v52 = vpop.f32.mrb[20].mxu1 }
0x1d8d   :  { %v1336_v31 = vadd.f32 %v1320_v52, %v2921_v17  ;;  %v2246_v53 = vpop.f32.mrb[21].mxu1  ;;  %v1327_v58 = vrot.slane %v1320_v52, 6 }
0x1d8e   :  { %v1323_v54 = vpop.f32.mrb[22].mxu1 }
0x1d8f   :  { %v1338_v55 = vrot.slane %v1336_v31, 6  ;;  %v2247_v57 = vpop.f32.mrb[23].mxu1  ;;  %v1329_v60 = vadd.f32 %v1327_v58, %v2941_v34 }
0x1d91   :  { %1339 = vrot.lane.b32.xlu1 %v1338_v55, %s2496_s6  ;;  %v2035_v61 = vmul.f32 -1.442695, %v1329_v60 }
0x1d93   :  { %2425 = vpow2.f32 %v2035_v61 }
0x1d9d   :  { %v2426_v0 = vpop.eup %2425 }
0x1d9e   :  { %v1333_v3 = vadd.f32 1.0, %v2426_v0 }
0x1da0   :  { %2427 = vrcp.f32 %v1333_v3 }
0x1daa   :  { %v2428_v5 = vpop.eup %2427 }
0x1dab   :  { %v1349_v8 = vsub.f32 1.0, %v2428_v5  ;;  %v1358_v41 = vmul.f32 %v2428_v5, %v1356_v9 }
0x1e03   :  { %v1340_v56 = vpop.permute.xlu1 %1339 }
0x1e04   :  { %v1342_v63 = vmul.f32 %v2428_v5, %v1340_v56 }
0x1e06   :  { %1344 = vrot.lane.b32.xlu0 %v1342_v63, %s2496_s6 }
0x1e78   :  { %v1345_v6 = vpop.permute.xlu0 %1344 }
0x1e79   :  { %v1347_v62 = vadd.f32 %v1345_v6, %v2941_v34 }
0x1e7b   :  { %2429 = vtanh.f32 %v1347_v62 }
0x1e85   :  { %v2430_v7 = vpop.eup %2429 }
0x1e86   :  { %1351 = vrot.lane.b32.xlu1 %v2430_v7, %s2497_s8 }
0x1ef8   :  { %v1352_v1 = vpop.permute.xlu1 %1351 }
0x1ef9   :  { %v1354_v10 = vmul.f32 %v1352_v1, %v1349_v8 }
0x1efb   :  { %v1359_v11 = vadd.f32 %v1358_v41, %v1354_v10 }
0x1efd   :  { %v1360_v12 = vpack.c.bf16 %v1359_v11, %v1359_v11  ;;  %v1438_v2 = vrot.slane %v1359_v11, 6  ;;  %v1847_v42 = vsel %vm1018_vm4, %v2947_v49, %v1359_v11 }
0x1eff   :  { %v1362_v13 = vrot.slane %v1360_v12, 1 }
0x1f01   :  { %1363 = vrot.lane.b32.xlu0 %v1362_v13, %s2497_s8 }
0x1f73   :  { %v1364_v15 = vpop.permute.xlu0 %1363 }
0x1f74   :  { %2253 = vmatmul.mubr.msk.bf16.vlgmr.msra.gmra.mrb[24].mxu0 %vm226_vm1, %v1364_v15 }
0x1f75   :  { %2265 = vmatpush3.bf16.msra.mxu0 %v2884_v43  ;;  %2268 = vmatprep.mubr.msk.bf16.mxu0 %vm2494_vm2, %v2493_v59 }
0x1f76   :  { %2266 = vmatprep.subr.bf16.mxu0 %v2493_v59 }
0x1f79   :  { %2267 = vmatpush3.bf16.msra.mxu0 %v2890_v45 }
0x1f7a   :  { %2280 = vmatprep.subr.bf16.mxu0 %v2493_v59 }
0x2047   :  { %v1402_v16 = vpop.f32.mrb[24].mxu0 }
0x2048   :  { %v1418_v18 = vadd.f32 %v1402_v16, %v2921_v17  ;;  %v2254_v19 = vpop.f32.mrb[25].mxu0  ;;  %v1409_v39 = vrot.slane %v1402_v16, 4 }
0x2049   :  { %v1405_v20 = vpop.f32.mrb[26].mxu0 }
0x204a   :  { %v1420_v21 = vrot.slane %v1418_v18, 4  ;;  %v2255_v22 = vpop.f32.mrb[27].mxu0  ;;  %v1411_v23 = vadd.f32 %v1409_v39, %v2941_v34 }
0x204c   :  { %1421 = vrot.lane.b32.xlu1 %v1420_v21, %s2496_s6  ;;  %v2037_v24 = vmul.f32 -1.442695, %v1411_v23 }
0x204e   :  { %2431 = vpow2.f32 %v2037_v24 }
0x2058   :  { %v2432_v25 = vpop.eup %2431 }
0x2059   :  { %v1415_v26 = vadd.f32 1.0, %v2432_v25 }
0x205b   :  { %2433 = vrcp.f32 %v1415_v26 }
0x2065   :  { %v2434_v27 = vpop.eup %2433 }
0x2066   :  { %v1431_v36 = vsub.f32 1.0, %v2434_v27  ;;  %v1440_v32 = vmul.f32 %v2434_v27, %v1438_v2 }
0x20be   :  { %v1422_v28 = vpop.permute.xlu1 %1421 }
0x20bf   :  { %v1424_v33 = vmul.f32 %v2434_v27, %v1422_v28 }
0x20c1   :  { %1426 = vrot.lane.b32.xlu0 %v1424_v33, %s2496_s6 }
0x2133   :  { %v1427_v4 = vpop.permute.xlu0 %1426 }
0x2134   :  { %v1429_v35 = vadd.f32 %v1427_v4, %v2941_v34 }
0x2136   :  { %2435 = vtanh.f32 %v1429_v35 }
0x2140   :  { %v2436_v30 = vpop.eup %2435 }
0x2141   :  { %1433 = vrot.lane.b32.xlu1 %v2436_v30, %s2497_s8 }
0x21b3   :  { %v1434_v38 = vpop.permute.xlu1 %1433 }
0x21b4   :  { %v1436_v40 = vmul.f32 %v1434_v38, %v1431_v36 }
0x21b6   :  { %v1441_v37 = vadd.f32 %v1440_v32, %v1436_v40 }
0x21b8   :  { %v1442_v44 = vpack.c.bf16 %v1441_v37, %v1441_v37  ;;  %v1848_v46 = vsel %vm1020_vm5, %v1847_v42, %v1441_v37  ;;  %v1520_v62 = vrot.slane %v1441_v37, 6 }
0x21ba   :  { %v1444_v47 = vrot.slane %v1442_v44, 2 }
0x21bc   :  { %1445 = vrot.lane.b32.xlu0 %v1444_v47, %s2497_s8 }
0x222e   :  { %v1446_v48 = vpop.permute.xlu0 %1445 }
0x222f   :  { %2261 = vmatmul.mubr.msk.bf16.vlgmr.msra.gmra.mrb[24].mxu1 %vm226_vm1, %v1446_v48 }
0x2230   :  { %2273 = vmatpush3.bf16.msra.mxu1 %v2884_v43  ;;  %2276 = vmatprep.mubr.msk.bf16.mxu1 %vm2494_vm2, %v2493_v59 }
0x2231   :  { %2274 = vmatprep.subr.bf16.mxu1 %v2493_v59 }
0x2234   :  { %2275 = vmatpush3.bf16.msra.mxu1 %v2890_v45 }
0x2235   :  { %2288 = vmatprep.subr.bf16.mxu1 %v2493_v59 }
0x2302   :  { %v1484_v49 = vpop.f32.mrb[24].mxu1 }
0x2303   :  { %v1500_v50 = vadd.f32 %v1484_v49, %v2921_v17  ;;  %v2262_v51 = vpop.f32.mrb[25].mxu1  ;;  %v1491_v54 = vrot.slane %v1484_v49, 2 }
0x2304   :  { %v1487_v52 = vpop.f32.mrb[26].mxu1 }
0x2305   :  { %v1502_v31 = vrot.slane %v1500_v50, 2  ;;  %v2263_v53 = vpop.f32.mrb[27].mxu1  ;;  %v1493_v55 = vadd.f32 %v1491_v54, %v2941_v34 }
0x2307   :  { %1503 = vrot.lane.b32.xlu1 %v1502_v31, %s2496_s6  ;;  %v2039_v57 = vmul.f32 -1.442695, %v1493_v55 }
0x2309   :  { %2437 = vpow2.f32 %v2039_v57 }
0x2313   :  { %v2438_v58 = vpop.eup %2437 }
0x2314   :  { %v1497_v60 = vadd.f32 1.0, %v2438_v58 }
0x2316   :  { %2439 = vrcp.f32 %v1497_v60 }
0x2320   :  { %v2440_v61 = vpop.eup %2439 }
0x2321   :  { %v1513_v6 = vsub.f32 1.0, %v2440_v61  ;;  %v1522_v8 = vmul.f32 %v2440_v61, %v1520_v62 }
0x2379   :  { %v1504_v0 = vpop.permute.xlu1 %1503 }
0x237a   :  { %v1506_v3 = vmul.f32 %v2440_v61, %v1504_v0 }
0x237c   :  { %1508 = vrot.lane.b32.xlu0 %v1506_v3, %s2496_s6 }
0x23ee   :  { %v1509_v5 = vpop.permute.xlu0 %1508 }
0x23ef   :  { %v1511_v56 = vadd.f32 %v1509_v5, %v2941_v34 }
0x23f1   :  { %2441 = vtanh.f32 %v1511_v56 }
0x23fb   :  { %v2442_v63 = vpop.eup %2441 }
0x23fc   :  { %1515 = vrot.lane.b32.xlu1 %v2442_v63, %s2497_s8 }
0x246e   :  { %v1516_v7 = vpop.permute.xlu1 %1515 }
0x246f   :  { %v1518_v9 = vmul.f32 %v1516_v7, %v1513_v6 }
0x2471   :  { %v1523_v1 = vadd.f32 %v1522_v8, %v1518_v9 }
0x2473   :  { %v1524_v41 = vpack.c.bf16 %v1523_v1, %v1523_v1  ;;  %v2998_v10 = vsel %vm1022_vm6, %v1848_v46, %v1523_v1  ;;  %v1598_v33 = vrot.slane %v1523_v1, 6 }
0x2475   :  { %v1526_v11 = vrot.slane %v1524_v41, 3 }
0x2477   :  { %1527 = vrot.lane.b32.xlu0 %v1526_v11, %s2497_s8 }
0x24e9   :  { %v1528_v12 = vpop.permute.xlu0 %1527 }
0x24ea   :  { %2269 = vmatmul.mubr.msk.bf16.vlgmr.msra.gmra.mrb[28].mxu0 %vm226_vm1, %v1528_v12 }
0x24eb   :  { %2281 = vmatpush3.bf16.msra.mxu0 %v2884_v43  ;;  %2284 = vmatprep.mubr.msk.bf16.mxu0 %vm2494_vm2, %v2493_v59 }
0x24ec   :  { %2282 = vmatprep.subr.bf16.mxu0 %v2493_v59 }
0x24ef   :  { %2283 = vmatpush3.bf16.msra.mxu0 %v2890_v45 }
0x25bd   :  { %v1566_v34 = vpop.f32.mrb[28].mxu0 }
0x25be   :  { %v1579_v13 = vadd.f32 %v1566_v34, %v2921_v17  ;;  %v2270_v15 = vpop.f32.mrb[29].mxu0  ;;  %v1572_v19 = vadd.f32 %v1566_v34, %v2939_v29 }
0x25bf   :  { %v1569_v16 = vpop.f32.mrb[30].mxu0 }
0x25c0   :  { %1581 = vrot.lane.b32.xlu1 %v1579_v13, %s2496_s6  ;;  %v2271_v18 = vpop.f32.mrb[31].mxu0  ;;  %v2041_v20 = vmul.f32 -1.442695, %v1572_v19 }
0x25c2   :  { %2443 = vpow2.f32 %v2041_v20 }
0x25cc   :  { %v2444_v21 = vpop.eup %2443 }
0x25cd   :  { %v1576_v22 = vadd.f32 1.0, %v2444_v21 }
0x25cf   :  { %2445 = vrcp.f32 %v1576_v22 }
0x25d9   :  { %v2446_v39 = vpop.eup %2445 }
0x25da   :  { %v1591_v28 = vsub.f32 1.0, %v2446_v39  ;;  %v1600_v35 = vmul.f32 %v2446_v39, %v1598_v33 }
0x2632   :  { %v1582_v23 = vpop.permute.xlu1 %1581 }
0x2633   :  { %v1584_v24 = vmul.f32 %v2446_v39, %v1582_v23 }
0x2635   :  { %1586 = vrot.lane.b32.xlu0 %v1584_v24, %s2496_s6 }
0x26a7   :  { %v1587_v25 = vpop.permute.xlu0 %1586 }
0x26a8   :  { %v1589_v26 = vadd.f32 %v1587_v25, %v2939_v29 }
0x26aa   :  { %2447 = vtanh.f32 %v1589_v26 }
0x26b4   :  { %v2448_v27 = vpop.eup %2447 }
0x26b5   :  { %1593 = vrot.lane.b32.xlu1 %v2448_v27, %s2497_s8 }
0x2727   :  { %v1594_v4 = vpop.permute.xlu1 %1593 }
0x2728   :  { %v1596_v30 = vmul.f32 %v1594_v4, %v1591_v28 }
0x272a   :  { %v3013_v36 = vadd.f32 %v1600_v35, %v1596_v30 }
0x272c   :  { %v1602_v2 = vpack.c.bf16 %v3013_v36, %v3013_v36  ;;  %v1679_v55 = vrot.slane %v3013_v36, 6 }
0x272e   :  { %1604 = vrot.lane.b32.xlu0 %v1602_v2, %s2497_s8 }
0x27a0   :  { %v1605_v38 = vpop.permute.xlu0 %1604 }
0x27a1   :  { %2277 = vmatmul.mubr.msk.bf16.vlgmr.msra.gmra.mrb[28].mxu1 %vm226_vm1, %v1605_v38 }
0x27a2   :  { %2289 = vmatpush3.bf16.msra.mxu1 %v2884_v43  ;;  %2292 = vmatprep.mubr.msk.bf16.mxu1 %vm2494_vm2, %v2493_v59 }
0x27a3   :  { %2290 = vmatprep.subr.bf16.mxu1 %v2493_v59 }
0x27a6   :  { %2291 = vmatpush3.bf16.msra.mxu1 %v2890_v45 }
0x2874   :  { %v1643_v32 = vpop.f32.mrb[28].mxu1 }
0x2875   :  { %v1659_v40 = vadd.f32 %v1643_v32, %v2921_v17  ;;  %v2278_v37 = vpop.f32.mrb[29].mxu1  ;;  %v1650_v47 = vrot.slane %v1643_v32, 6 }
0x2876   :  { %v1646_v42 = vpop.f32.mrb[30].mxu1 }
0x2877   :  { %v1661_v44 = vrot.slane %v1659_v40, 6  ;;  %v2279_v46 = vpop.f32.mrb[31].mxu1  ;;  %v1652_v48 = vadd.f32 %v1650_v47, %v2939_v29 }
0x2879   :  { %1662 = vrot.lane.b32.xlu1 %v1661_v44, %s2496_s6  ;;  %v2043_v43 = vmul.f32 -1.442695, %v1652_v48 }
0x287b   :  { %2449 = vpow2.f32 %v2043_v43 }
0x2885   :  { %v2450_v49 = vpop.eup %2449 }
0x2886   :  { %v1656_v50 = vadd.f32 1.0, %v2450_v49 }
0x2888   :  { %2451 = vrcp.f32 %v1656_v50  ;;  %v1853_v50 = vld [vmem:[%s3119_s15] sm:$0xff] }
0x2892   :  { %v2452_v59 = vpop.eup %2451 }
0x2893   :  { %v1672_v54 = vsub.f32 1.0, %v2452_v59  ;;  %v1681_v58 = vmul.f32 %v2452_v59, %v1679_v55 }
0x28eb   :  { %v1663_v51 = vpop.permute.xlu1 %1662 }
0x28ec   :  { %v1665_v45 = vmul.f32 %v2452_v59, %v1663_v51  ;;  %v1854_v59 = vld [vmem:[%s3119_s15 + $0x8] sm:$0xff]  ;;  %v1855_v51 = vld [vmem:[%s3119_s15 + $0x10] sm:$0xff] }
0x28ee   :  { %1667 = vrot.lane.b32.xlu0 %v1665_v45, %s2496_s6 }
0x2960   :  { %v1668_v52 = vpop.permute.xlu0 %1667 }
0x2961   :  { %v1670_v31 = vadd.f32 %v1668_v52, %v2939_v29 }
0x2963   :  { %2453 = vtanh.f32 %v1670_v31 }
0x296d   :  { %v2454_v53 = vpop.eup %2453 }
0x296e   :  { %1674 = vrot.lane.b32.xlu1 %v2454_v53, %s2497_s8 }
0x29e0   :  { %v1675_v57 = vpop.permute.xlu1 %1674 }
0x29e1   :  { %v1677_v60 = vmul.f32 %v1675_v57, %v1672_v54 }
0x29e3   :  { %v1682_v61 = vadd.f32 %v1681_v58, %v1677_v60 }
0x29e5   :  { %v1683_v0 = vpack.c.bf16 %v1682_v61, %v1682_v61  ;;  %v1761_v21 = vrot.slane %v1682_v61, 6  ;;  %v1850_v25 = vsel %vm1018_vm4, %v3013_v36, %v1682_v61 }
0x29e7   :  { %v1685_v3 = vrot.slane %v1683_v0, 1  ;;  %v2048_v0 = vld [vmem:[#allocation2] ss:$0 sm:$0xff] }
0x29e9   :  { %1686 = vrot.lane.b32.xlu0 %v1685_v3, %s2497_s8 }
0x2a5b   :  { %v1687_v5 = vpop.permute.xlu0 %1686 }
0x2a5c   :  { %2285 = vmatmul.mubr.msk.bf16.vlgmr.msra.gmra.mrb[32].mxu0 %vm226_vm1, %v1687_v5 }
0x2b2f   :  { %v1725_v56 = vpop.f32.mrb[32].mxu0 }
0x2b30   :  { %v1741_v63 = vadd.f32 %v1725_v56, %v2921_v17  ;;  %v2286_v6 = vpop.f32.mrb[33].mxu0  ;;  %v1732_v9 = vrot.slane %v1725_v56, 4 }
0x2b31   :  { %v1728_v62 = vpop.f32.mrb[34].mxu0 }
0x2b32   :  { %v1743_v7 = vrot.slane %v1741_v63, 4  ;;  %v2287_v8 = vpop.f32.mrb[35].mxu0  ;;  %v1734_v1 = vadd.f32 %v1732_v9, %v2939_v29 }
0x2b34   :  { %1744 = vrot.lane.b32.xlu1 %v1743_v7, %s2496_s6  ;;  %v2045_v41 = vmul.f32 -1.442695, %v1734_v1 }
0x2b36   :  { %2455 = vpow2.f32 %v2045_v41 }
0x2b40   :  { %v2456_v11 = vpop.eup %2455 }
0x2b41   :  { %v1738_v12 = vadd.f32 1.0, %v2456_v11 }
0x2b43   :  { %2457 = vrcp.f32 %v1738_v12 }
0x2b4d   :  { %v2458_v34 = vpop.eup %2457 }
0x2b4e   :  { %v1754_v20 = vsub.f32 1.0, %v2458_v34  ;;  %v1763_v39 = vmul.f32 %v2458_v34, %v1761_v21 }
0x2ba6   :  { %v1745_v13 = vpop.permute.xlu1 %1744 }
0x2ba7   :  { %v1747_v15 = vmul.f32 %v2458_v34, %v1745_v13 }
0x2ba9   :  { %1749 = vrot.lane.b32.xlu0 %v1747_v15, %s2496_s6 }
0x2c1b   :  { %v1750_v16 = vpop.permute.xlu0 %1749 }
0x2c1c   :  { %v1752_v18 = vadd.f32 %v1750_v16, %v2939_v29 }
0x2c1e   :  { %2459 = vtanh.f32 %v1752_v18 }
0x2c28   :  { %v2460_v19 = vpop.eup %2459 }
0x2c29   :  { %1756 = vrot.lane.b32.xlu1 %v2460_v19, %s2497_s8 }
0x2c9b   :  { %v1757_v22 = vpop.permute.xlu1 %1756 }
0x2c9c   :  { %v1759_v23 = vmul.f32 %v1757_v22, %v1754_v20 }
0x2c9e   :  { %v1764_v24 = vadd.f32 %v1763_v39, %v1759_v23 }
0x2ca0   :  { %v1765_v26 = vpack.c.bf16 %v1764_v24, %v1764_v24  ;;  %v1851_v27 = vsel %vm1020_vm5, %v1850_v25, %v1764_v24  ;;  %v1843_v53 = vrot.slane %v1764_v24, 6 }
0x2ca2   :  { %v1767_v28 = vrot.slane %v1765_v26, 2 }
0x2ca4   :  { %1768 = vrot.lane.b32.xlu0 %v1767_v28, %s2497_s8 }
0x2d16   :  { %v1769_v33 = vpop.permute.xlu0 %1768 }
0x2d17   :  { %2293 = vmatmul.mubr.msk.bf16.vlgmr.msra.gmra.mrb[32].mxu1 %vm226_vm1, %v1769_v33 }
0x2dea   :  { %v1807_v4 = vpop.f32.mrb[32].mxu1 }
0x2deb   :  { %v1823_v35 = vadd.f32 %v1807_v4, %v2921_v17  ;;  %v2294_v30 = vpop.f32.mrb[33].mxu1  ;;  %v1814_v40 = vrot.slane %v1807_v4, 2 }
0x2dec   :  { %v1810_v2 = vpop.f32.mrb[34].mxu1 }
0x2ded   :  { %v1825_v38 = vrot.slane %v1823_v35, 2  ;;  %v2295_v32 = vpop.f32.mrb[35].mxu1  ;;  %v1816_v36 = vadd.f32 %v1814_v40, %v2939_v29 }
0x2def   :  { %1826 = vrot.lane.b32.xlu1 %v1825_v38, %s2496_s6  ;;  %v2047_v37 = vmul.f32 -1.442695, %v1816_v36 }
0x2df1   :  { %2461 = vpow2.f32 %v2047_v37 }
0x2dfb   :  { %v2462_v42 = vpop.eup %2461 }
0x2dfc   :  { %v1820_v44 = vadd.f32 1.0, %v2462_v42 }
0x2dfe   :  { %2463 = vrcp.f32 %v1820_v44 }
0x2e08   :  { %v2464_v46 = vpop.eup %2463 }
0x2e09   :  { %v1836_v31 = vsub.f32 1.0, %v2464_v46  ;;  %v1845_v55 = vmul.f32 %v2464_v46, %v1843_v53 }
0x2e61   :  { %v1827_v47 = vpop.permute.xlu1 %1826 }
0x2e62   :  { %v1829_v48 = vmul.f32 %v2464_v46, %v1827_v47 }
0x2e64   :  { %1831 = vrot.lane.b32.xlu0 %v1829_v48, %s2496_s6 }
0x2e68   :  { %1866 = vrot.lane.b32.xlu0 %v2998_v10, %s2497_s8  ;;  %v2339_v10 = vpack.c.bf16 %v1854_v59, %v1853_v50 }
0x2e6a   :  { %2340 = vmatprep.subr.bf16.mxu0 %v2339_v10 }
0x2e6b   :  { %2342 = vmatpush3.bf16.msra.mxu0 %v2339_v10 }
0x2ed6   :  { %v1832_v17 = vpop.permute.xlu0 %1831 }
0x2ed7   :  { %v1834_v43 = vadd.f32 %v1832_v17, %v2939_v29  ;;  %v1856_v29 = vld [vmem:[%s3119_s15 + $0x18] sm:$0xff] }
0x2ed8   :  { %v2343_v45 = vpack.c.bf16 %v1856_v29, %v1855_v51 }
0x2ed9   :  { %2465 = vtanh.f32 %v1834_v43 }
0x2eda   :  { %v1867_v49 = vpop.permute.xlu0 %1866  ;;  %2344 = vmatprep.subr.bf16.mxu0 %v2343_v45 }
0x2edb   :  { %2304 = vmatprep.mubr.msk.f32.mxu0 %vm226_vm1, %v1867_v49  ;;  %2346 = vmatpush3.bf16.msra.mxu0 %v2343_v45 }
0x2ee3   :  { %v2466_v52 = vpop.eup %2465 }
0x2ee4   :  { %1838 = vrot.lane.b32.xlu1 %v2466_v52, %s2497_s8 }
0x2f56   :  { %v1839_v54 = vpop.permute.xlu1 %1838 }
0x2f57   :  { %v1841_v57 = vmul.f32 %v1839_v54, %v1836_v31 }
0x2f59   :  { %v1846_v58 = vadd.f32 %v1845_v55, %v1841_v57 }
0x2f5b   :  { %v1852_v60 = vsel %vm1022_vm6, %v1851_v27, %v1846_v58 }
0x2f5c   :  { %1868 = vrot.lane.b32.xlu1 %v1852_v60, %s2497_s8 }
0x2fce   :  { %v1869_v61 = vpop.permute.xlu1 %1868 }
0x2fcf   :  { %2305 = vmatmul.mubr.msk.f32.vlgmr.msra.gmra.mrb[2].mxu0 %vm226_vm1, %v1869_v61 }
0x30a2   :  { %v2306_v3 = vpop.f32.mrb[2].mxu0 }
0x30a3   :  { %v1946_v5 = vadd.f32 %v2306_v3, %v2048_v0  ;;  %v1940_v56 = vpop.f32.mrb[3].mxu0 }
0x30a4   :  { %v1941_v63 = vadd.f32 %v2048_v0, %v1940_v56 }
0x30a5   :  { %v1968_v6 = vcombine.high %v1946_v5, %v1946_v5  ;;  %v1975_v62 = vrot.slane %v1946_v5, %v2626_v14 }
0x30a6   :  { %v1951_v7 = vcombine.high %v1941_v63, %v1941_v63  ;;  %v1958_v8 = vrot.slane %v1941_v63, %v2626_v14 }
0x30a7   :  { %v1982_v9 = vrot.slane %v1968_v6, %v2626_v14  ;;  %v1983_v1 = vcombine.high %v1975_v62, %v1975_v62  ;;  %1998 = vst.msk [vmem:[%s3121_s17 + $0x8] sm:$0x3] %vm1993_vm7, %v1975_v62 }
0x30a8   :  { %v1965_v41 = vrot.slane %v1951_v7, %v2626_v14  ;;  %v1966_v11 = vcombine.high %v1958_v8, %v1958_v8  ;;  %1994 = vst.msk [vmem:[%s3121_s17] sm:$0x3] %vm1993_vm7, %v1958_v8 }
0x30a9   :  { %v1984_v12 = vcombine.high %v1982_v9, %v1982_v9  ;;  %1999 = vst.msk [vmem:[%s3121_s17 + $0xa] sm:$0x3] %vm1993_vm7, %v1983_v1  ;;  %2000 = vst.msk [vmem:[%s3121_s17 + $0xc] sm:$0x3] %vm1993_vm7, %v1982_v9 }
0x30aa   :  { %v1967_v34 = vcombine.high %v1965_v41, %v1965_v41  ;;  %1995 = vst.msk [vmem:[%s3121_s17 + $0x2] sm:$0x3] %vm1993_vm7, %v1966_v11  ;;  %1996 = vst.msk [vmem:[%s3121_s17 + $0x4] sm:$0x3] %vm1993_vm7, %v1965_v41 }
0x30ab   :  { %2001 = vst.msk [vmem:[%s3121_s17 + $0xe] sm:$0x3] %vm1993_vm7, %v1984_v12 }
0x30ac   :  { %1997 = vst.msk [vmem:[%s3121_s17 + $0x6] sm:$0x3] %vm1993_vm7, %v1967_v34 }
0x30ad   :  { %2006 = vsyncpa [#allocation3], 1 }

</bundles_post_ra>
